<compile_context>
chip_gen: v7x
topology: tpu7x:2x2x1
jax: 0.10.0
libtpu: 0.0.40
codegen_flags: <defaults>
</compile_context>

<pallas_src>
import jax
import jax.numpy as jnp
from jax import lax
from jax.experimental import pallas as pl
from jax.experimental.pallas import tpu as pltpu


# ---------------------------------------------------------------------------
# Fused kernel
# ---------------------------------------------------------------------------
def _make_fused_kernel(*, TR, R_in, Wo, s, has_res):
    """Build the fused expand->depthwise->project kernel for one row tile."""

    def kernel(xv_ref, w1_ref, w2_ref, b2_ref, w3_ref, b3_ref, *rest):
        if has_res:
            res_ref, o_ref = rest
        else:
            (o_ref,) = rest

        j = pl.program_id(1)
        row0 = pl.multiple_of(j * (TR * s), TR * s)   # first padded input row of tile

        # ---- expand 1x1 conv (BN1 scale folded into w1, BN1 bias carried by the
        #      ones-channel) + ReLU6.  Padded pixels are all-zero rows -> e == 0.
        xin = xv_ref[0, :, pl.ds(row0, R_in)]                # (3, R_in, Wo, Cin+1)
        x2 = xin.reshape(3 * R_in * Wo, xin.shape[-1])
        e = jnp.clip(
            jnp.dot(x2, w1_ref[...], preferred_element_type=jnp.float32),
            0.0, 6.0)                                         # (3*R_in*Wo, Ce)

        # ---- depthwise 3x3 (stride s) + BN2 + ReLU6.
        # Column taps were pre-decimated into the 3 views; row taps are static,
        # tile-aligned slices of `e` (no strided loads needed).
        w2 = w2_ref[...]                                      # (9, Ce)
        Ce = w2.shape[1]
        if s == 1:
            acc = jnp.zeros((TR * Wo, Ce), jnp.float32)
            for kh in range(3):
                for kw in range(3):
                    base = (kw * R_in + kh) * Wo
                    acc = acc + e[base:base + TR * Wo] * w2[kh * 3 + kw]
        else:
            rows = []
            for r in range(TR):                               # static unroll (small TR)
                a = jnp.zeros((Wo, Ce), jnp.float32)
                for kh in range(3):
                    for kw in range(3):
                        base = (kw * R_in + s * r + kh) * Wo
                        a = a + e[base:base + Wo] * w2[kh * 3 + kw]
                rows.append(a)
            acc = jnp.concatenate(rows, axis=0)
        y = jnp.clip(acc + b2_ref[...], 0.0, 6.0)             # (TR*Wo, Ce)

        # ---- project 1x1 conv + BN3 + ReLU6 (+ fused residual add).
        out = jnp.dot(y, w3_ref[...], preferred_element_type=jnp.float32)
        out = jnp.clip(out + b3_ref[...], 0.0, 6.0)
        if has_res:
            out = out + res_ref[0]
        o_ref[0] = out.astype(o_ref.dtype)

    return kernel


def _pick_row_tile(Ho, Wo):
    # Largest divisor of Ho keeping the flattened tile (TR*Wo rows) <= ~2048,
    # but prefer >=2 row tiles when that still leaves >=128-row tiles.
    tr = 1
    for cand in range(1, Ho + 1):
        if Ho % cand == 0 and cand * Wo <= 2048:
            tr = cand
    if tr == Ho and Ho % 2 == 0 and (Ho // 2) * Wo >= 128:
        tr = Ho // 2
    return tr


def _fused_block(xv, w1a, w2, b2, w3, b3, res2d, *, Ho, Wo, Cout, TR, R_in, s):
    N, _, Hp, _, Caug = xv.shape
    Ce = w2.shape[1]
    n_row_tiles = Ho // TR
    has_res = res2d is not None

    in_specs = [
        # full padded image views per batch element (re-fetched only when n changes)
        pl.BlockSpec((1, 3, Hp, Wo, Caug), lambda n, j: (n, 0, 0, 0, 0)),
        pl.BlockSpec((Caug, Ce), lambda n, j: (0, 0)),   # expand weight (+bias row)
        pl.BlockSpec((9, Ce), lambda n, j: (0, 0)),      # depthwise weights (folded BN2 scale)
        pl.BlockSpec((1, Ce), lambda n, j: (0, 0)),      # BN2 bias
        pl.BlockSpec((Ce, Cout), lambda n, j: (0, 0)),   # project weight (folded BN3 scale)
        pl.BlockSpec((1, Cout), lambda n, j: (0, 0)),    # BN3 bias
    ]
    args = [xv, w1a, w2, b2, w3, b3]
    if has_res:
        in_specs.append(pl.BlockSpec((1, TR * Wo, Cout), lambda n, j: (n, j, 0)))
        args.append(res2d)

    kernel = _make_fused_kernel(TR=TR, R_in=R_in, Wo=Wo, s=s, has_res=has_res)

    return pl.pallas_call(
        kernel,
        out_shape=jax.ShapeDtypeStruct((N, Ho * Wo, Cout), jnp.float32),
        grid=(N, n_row_tiles),
        in_specs=in_specs,
        out_specs=pl.BlockSpec((1, TR * Wo, Cout), lambda n, j: (n, j, 0)),
        compiler_params=pltpu.CompilerParams(
            dimension_semantics=("parallel", "parallel")),
    )(*args)


# ---------------------------------------------------------------------------
# Parameters / BN folding
# ---------------------------------------------------------------------------
def _bn_fold(gamma, beta, mean, var, eps=1e-5):
    scale = gamma / jnp.sqrt(var + eps)
    bias = beta - mean * scale
    return scale.astype(jnp.float32), bias.astype(jnp.float32)


def init_block_params(key, p_c, i, t, c, n, s):
    _s = s if i == n - 1 else 1
    _c = c if i == n - 1 else p_c
    _p_c = p_c * t

    ks = jax.random.split(key, 6)

    def bn_init(k, ch):
        k1, k2, k3, k4 = jax.random.split(k, 4)
        gamma = jax.random.uniform(k1, (ch,), jnp.float32, 0.5, 1.5)
        beta = 0.1 * jax.random.normal(k2, (ch,), jnp.float32)
        mean = 0.1 * jax.random.normal(k3, (ch,), jnp.float32)
        var = jax.random.uniform(k4, (ch,), jnp.float32, 0.5, 1.5)
        return gamma, beta, mean, var

    w1 = 0.1 * jax.random.normal(ks[0], (_p_c, p_c, 1, 1), jnp.float32)  # expand (OIHW)
    w2 = 0.1 * jax.random.normal(ks[1], (_p_c, 1, 3, 3), jnp.float32)    # depthwise
    w3 = 0.1 * jax.random.normal(ks[2], (_c, _p_c, 1, 1), jnp.float32)   # project

    return dict(
        w1=w1, w2=w2, w3=w3,
        bn1=bn_init(ks[3], _p_c), bn2=bn_init(ks[4], _p_c), bn3=bn_init(ks[5], _c),
        i=i, n=n, s=_s, p_c=p_c, _p_c=_p_c, _c=_c,
    )


# ---------------------------------------------------------------------------
# Block forward (fused Pallas)
# ---------------------------------------------------------------------------
def block_forward(x_nchw, p):
    # NCHW (PyTorch) -> NHWC for the kernel, back to NCHW at the end.
    x = jnp.transpose(x_nchw, (0, 2, 3, 1)).astype(jnp.float32)
    N, H, W, Cin = x.shape
    s = p["s"]
    Ce = p["_p_c"]
    Cout = p["_c"]
    Ho = (H - 1) // s + 1   # 3x3, pad=1
    Wo = (W - 1) // s + 1

    # --- fold BN scale into conv weights (kernel only does bias + clip) ---
    s1, b1 = _bn_fold(*p["bn1"])
    s2, b2 = _bn_fold(*p["bn2"])
    s3, b3 = _bn_fold(*p["bn3"])
    w1 = jnp.transpose(p["w1"][:, :, 0, 0], (1, 0)) * s1                 # (Cin, Ce)
    w1a = jnp.concatenate([w1, b1[None, :]], axis=0)                     # (Cin+1, Ce)
    w2 = jnp.transpose(p["w2"][:, 0, :, :].reshape(Ce, 9), (1, 0)) * s2  # (9, Ce)
    w3 = jnp.transpose(p["w3"][:, :, 0, 0], (1, 0)) * s3                 # (Ce, Cout)
    b2 = b2.reshape(1, Ce)
    b3 = b3.reshape(1, Cout)

    # --- augmented (ones-channel), zero-padded input and 3 column-shifted
    #     stride-s views (pre-expand, so only ~3x the *small* input in HBM) ---
    xa = jnp.concatenate([x, jnp.ones((N, H, W, 1), jnp.float32)], axis=-1)
    xp = jnp.pad(xa, ((0, 0), (1, 1), (1, 1), (0, 0)))                   # (N,H+2,W+2,Cin+1)
    views = [
        lax.slice(xp, (0, 0, kw, 0),
                  (N, H + 2, kw + s * (Wo - 1) + 1, Cin + 1),
                  (1, 1, s, 1))
        for kw in range(3)
    ]
    xv = jnp.stack(views, axis=1)                                        # (N,3,H+2,Wo,Cin+1)

    # --- row tiling ---
    TR = _pick_row_tile(Ho, Wo)
    R_in = (TR - 1) * s + 3
    assert Ho % TR == 0

    residual = None
    if p["i"] != p["n"] - 1:                   # s == 1 and Cout == Cin in this case
        residual = x.reshape(N, H * W, Cin)

    out2d = _fused_block(xv, w1a, w2, b2, w3, b3, residual,
                         Ho=Ho, Wo=Wo, Cout=Cout, TR=TR, R_in=R_in, s=s)
    out = out2d.reshape(N, Ho, Wo, Cout)
    return jnp.transpose(out, (0, 3, 1, 2))    # back to NCHW


# ---------------------------------------------------------------------------
# Pure-JAX reference (NCHW, mirrors the PyTorch Sequential in eval mode)
# ---------------------------------------------------------------------------
def block_ref(x_nchw, p):
    eps = 1e-5

    def bn(y, bnp):
        gamma, beta, mean, var = bnp
        sh = (1, -1, 1, 1)
        return ((y - mean.reshape(sh)) / jnp.sqrt(var.reshape(sh) + eps)
                * gamma.reshape(sh) + beta.reshape(sh))

    def relu6(y):
        return jnp.clip(y, 0.0, 6.0)

    dn = ("NCHW", "OIHW", "NCHW")
    y = lax.conv_general_dilated(x_nchw, p["w1"], (1, 1), "VALID",
                                 dimension_numbers=dn)
    y = relu6(bn(y, p["bn1"]))
    y = lax.conv_general_dilated(y, p["w2"], (p["s"], p["s"]), ((1, 1), (1, 1)),
                                 dimension_numbers=dn,
                                 feature_group_count=p["_p_c"])
    y = relu6(bn(y, p["bn2"]))
    y = lax.conv_general_dilated(y, p["w3"], (1, 1), "VALID",
                                 dimension_numbers=dn)
    y = relu6(bn(y, p["bn3"]))
    if p["i"] != p["n"] - 1:
        y = y + x_nchw
    return y


# ---------------------------------------------------------------------------
if __name__ == "__main__":
    key = jax.random.PRNGKey(0)
    kx, kp1, kp2 = jax.random.split(key, 3)
    x = jax.random.normal(kx, (2, 8, 16, 16), jnp.float32)  # NCHW, p_c = 8

    # Case 1: intermediate block (i != n-1): stride 1, residual connection.
    params1 = init_block_params(kp1, p_c=8, i=0, t=4, c=16, n=2, s=2)
    out1 = jax.block_until_ready(block_forward(x, params1))
    ref1 = block_ref(x, params1)
    assert out1.shape == (2, 8, 16, 16), out1.shape
    assert jnp.allclose(out1, ref1, atol=1e-3, rtol=1e-3)

    # Case 2: last block of the stage (i == n-1): stride 2, channel change, no residual.
    params2 = init_block_params(kp2, p_c=8, i=1, t=4, c=16, n=2, s=2)
    out2 = jax.block_until_ready(block_forward(x, params2))
    ref2 = block_ref(x, params2)
    assert out2.shape == (2, 16, 8, 8), out2.shape
    assert jnp.allclose(out2, ref2, atol=1e-3, rtol=1e-3)

    print("KERNEL_OK")
</pallas_src>

<mosaic_0001>
module attributes {stable_mosaic.version = 11 : i64} {
  func.func @kernel(%arg0: i32, %arg1: i32, %arg2: memref<1x3x18x16x9xf32, #tpu.memory_space<vmem>>, %arg3: memref<9x32xf32, #tpu.memory_space<vmem>>, %arg4: memref<9x32xf32, #tpu.memory_space<vmem>>, %arg5: memref<1x32xf32, #tpu.memory_space<vmem>>, %arg6: memref<32x8xf32, #tpu.memory_space<vmem>>, %arg7: memref<1x8xf32, #tpu.memory_space<vmem>>, %arg8: memref<1x128x8xf32, #tpu.memory_space<vmem>>, %arg9: memref<1x128x8xf32, #tpu.memory_space<vmem>>) attributes {dimension_semantics = [#tpu.dimension_semantics<parallel>, #tpu.dimension_semantics<parallel>], iteration_bounds = array<i64: 2, 2>, scalar_prefetch = 0 : i64, scratch_operands = 0 : i64, tpu.core_type = #tpu.core_type<tc>, window_params = [{transform_indices = @transform_0, window_bounds = array<i64: 1, 3, 18, 16, 9>}, {pipeline_mode = #tpu.pipeline_mode<synchronous>, transform_indices = @transform_1, window_bounds = array<i64: 9, 32>}, {pipeline_mode = #tpu.pipeline_mode<synchronous>, transform_indices = @transform_2, window_bounds = array<i64: 9, 32>}, {pipeline_mode = #tpu.pipeline_mode<synchronous>, transform_indices = @transform_3, window_bounds = array<i64: 1, 32>}, {pipeline_mode = #tpu.pipeline_mode<synchronous>, transform_indices = @transform_4, window_bounds = array<i64: 32, 8>}, {pipeline_mode = #tpu.pipeline_mode<synchronous>, transform_indices = @transform_5, window_bounds = array<i64: 1, 8>}, {transform_indices = @transform_6, window_bounds = array<i64: 1, 128, 8>}, {transform_indices = @transform_7, window_bounds = array<i64: 1, 128, 8>}]} {
    %c8_i32 = arith.constant 8 : i32
    %0 = arith.muli %arg1, %c8_i32 : i32
    %1 = tpu.assume_multiple %0, 8 : i32
    %c0 = arith.constant 0 : index
    %c0_0 = arith.constant 0 : index
    %2 = arith.index_cast %1 : i32 to index
    %c0_1 = arith.constant 0 : index
    %c0_2 = arith.constant 0 : index
    %3 = vector.load %arg2[%c0, %c0_0, %2, %c0_1, %c0_2] : memref<1x3x18x16x9xf32, #tpu.memory_space<vmem>>, vector<1x3x10x16x9xf32>
    %4 = vector.shape_cast %3 : vector<1x3x10x16x9xf32> to vector<3x10x16x9xf32>
    %5 = vector.shape_cast %4 : vector<3x10x16x9xf32> to vector<480x9xf32>
    %c0_3 = arith.constant 0 : index
    %c0_4 = arith.constant 0 : index
    %6 = vector.load %arg3[%c0_3, %c0_4] : memref<9x32xf32, #tpu.memory_space<vmem>>, vector<9x32xf32>
    %cst = arith.constant dense<0.000000e+00> : vector<480x32xf32>
    %7 = tpu.matmul %5, %6, %cst {dimension_numbers = #tpu.dot_dimension_numbers<[1], [0], [0], [1], [0, 0, 1, 1], [], []>} : vector<480x9xf32>, vector<9x32xf32>, vector<480x32xf32> -> vector<480x32xf32>
    %cst_5 = arith.constant 0.000000e+00 : f32
    %cst_6 = arith.constant 6.000000e+00 : f32
    %8 = vector.broadcast %cst_5 : f32 to vector<480x32xf32>
    %9 = arith.maximumf %8, %7 : vector<480x32xf32>
    %10 = vector.broadcast %cst_6 : f32 to vector<480x32xf32>
    %11 = arith.minimumf %10, %9 : vector<480x32xf32>
    %c0_7 = arith.constant 0 : index
    %c0_8 = arith.constant 0 : index
    %12 = vector.load %arg4[%c0_7, %c0_8] : memref<9x32xf32, #tpu.memory_space<vmem>>, vector<9x32xf32>
    %cst_9 = arith.constant 0.000000e+00 : f32
    %13 = vector.broadcast %cst_9 : f32 to vector<128x32xf32>
    %14 = vector.extract_strided_slice %11 {offsets = [0, 0], sizes = [128, 32], strides = [1, 1]} : vector<480x32xf32> to vector<128x32xf32>
    %15 = vector.extract_strided_slice %12 {offsets = [0, 0], sizes = [1, 32], strides = [1, 1]} : vector<9x32xf32> to vector<1x32xf32>
    %16 = vector.shape_cast %15 : vector<1x32xf32> to vector<32xf32>
    %17 = vector.shape_cast %16 : vector<32xf32> to vector<1x32xf32>
    %18 = vector.broadcast %17 : vector<1x32xf32> to vector<128x32xf32>
    %19 = arith.mulf %14, %18 : vector<128x32xf32>
    %20 = arith.addf %13, %19 : vector<128x32xf32>
    %21 = vector.extract_strided_slice %11 {offsets = [160, 0], sizes = [128, 32], strides = [1, 1]} : vector<480x32xf32> to vector<128x32xf32>
    %22 = vector.extract_strided_slice %12 {offsets = [1, 0], sizes = [1, 32], strides = [1, 1]} : vector<9x32xf32> to vector<1x32xf32>
    %23 = vector.shape_cast %22 : vector<1x32xf32> to vector<32xf32>
    %24 = vector.shape_cast %23 : vector<32xf32> to vector<1x32xf32>
    %25 = vector.broadcast %24 : vector<1x32xf32> to vector<128x32xf32>
    %26 = arith.mulf %21, %25 : vector<128x32xf32>
    %27 = arith.addf %20, %26 : vector<128x32xf32>
    %28 = vector.extract_strided_slice %11 {offsets = [320, 0], sizes = [128, 32], strides = [1, 1]} : vector<480x32xf32> to vector<128x32xf32>
    %29 = vector.extract_strided_slice %12 {offsets = [2, 0], sizes = [1, 32], strides = [1, 1]} : vector<9x32xf32> to vector<1x32xf32>
    %30 = vector.shape_cast %29 : vector<1x32xf32> to vector<32xf32>
    %31 = vector.shape_cast %30 : vector<32xf32> to vector<1x32xf32>
    %32 = vector.broadcast %31 : vector<1x32xf32> to vector<128x32xf32>
    %33 = arith.mulf %28, %32 : vector<128x32xf32>
    %34 = arith.addf %27, %33 : vector<128x32xf32>
    %35 = vector.extract_strided_slice %11 {offsets = [16, 0], sizes = [128, 32], strides = [1, 1]} : vector<480x32xf32> to vector<128x32xf32>
    %36 = vector.extract_strided_slice %12 {offsets = [3, 0], sizes = [1, 32], strides = [1, 1]} : vector<9x32xf32> to vector<1x32xf32>
    %37 = vector.shape_cast %36 : vector<1x32xf32> to vector<32xf32>
    %38 = vector.shape_cast %37 : vector<32xf32> to vector<1x32xf32>
    %39 = vector.broadcast %38 : vector<1x32xf32> to vector<128x32xf32>
    %40 = arith.mulf %35, %39 : vector<128x32xf32>
    %41 = arith.addf %34, %40 : vector<128x32xf32>
    %42 = vector.extract_strided_slice %11 {offsets = [176, 0], sizes = [128, 32], strides = [1, 1]} : vector<480x32xf32> to vector<128x32xf32>
    %43 = vector.extract_strided_slice %12 {offsets = [4, 0], sizes = [1, 32], strides = [1, 1]} : vector<9x32xf32> to vector<1x32xf32>
    %44 = vector.shape_cast %43 : vector<1x32xf32> to vector<32xf32>
    %45 = vector.shape_cast %44 : vector<32xf32> to vector<1x32xf32>
    %46 = vector.broadcast %45 : vector<1x32xf32> to vector<128x32xf32>
    %47 = arith.mulf %42, %46 : vector<128x32xf32>
    %48 = arith.addf %41, %47 : vector<128x32xf32>
    %49 = vector.extract_strided_slice %11 {offsets = [336, 0], sizes = [128, 32], strides = [1, 1]} : vector<480x32xf32> to vector<128x32xf32>
    %50 = vector.extract_strided_slice %12 {offsets = [5, 0], sizes = [1, 32], strides = [1, 1]} : vector<9x32xf32> to vector<1x32xf32>
    %51 = vector.shape_cast %50 : vector<1x32xf32> to vector<32xf32>
    %52 = vector.shape_cast %51 : vector<32xf32> to vector<1x32xf32>
    %53 = vector.broadcast %52 : vector<1x32xf32> to vector<128x32xf32>
    %54 = arith.mulf %49, %53 : vector<128x32xf32>
    %55 = arith.addf %48, %54 : vector<128x32xf32>
    %56 = vector.extract_strided_slice %11 {offsets = [32, 0], sizes = [128, 32], strides = [1, 1]} : vector<480x32xf32> to vector<128x32xf32>
    %57 = vector.extract_strided_slice %12 {offsets = [6, 0], sizes = [1, 32], strides = [1, 1]} : vector<9x32xf32> to vector<1x32xf32>
    %58 = vector.shape_cast %57 : vector<1x32xf32> to vector<32xf32>
    %59 = vector.shape_cast %58 : vector<32xf32> to vector<1x32xf32>
    %60 = vector.broadcast %59 : vector<1x32xf32> to vector<128x32xf32>
    %61 = arith.mulf %56, %60 : vector<128x32xf32>
    %62 = arith.addf %55, %61 : vector<128x32xf32>
    %63 = vector.extract_strided_slice %11 {offsets = [192, 0], sizes = [128, 32], strides = [1, 1]} : vector<480x32xf32> to vector<128x32xf32>
    %64 = vector.extract_strided_slice %12 {offsets = [7, 0], sizes = [1, 32], strides = [1, 1]} : vector<9x32xf32> to vector<1x32xf32>
    %65 = vector.shape_cast %64 : vector<1x32xf32> to vector<32xf32>
    %66 = vector.shape_cast %65 : vector<32xf32> to vector<1x32xf32>
    %67 = vector.broadcast %66 : vector<1x32xf32> to vector<128x32xf32>
    %68 = arith.mulf %63, %67 : vector<128x32xf32>
    %69 = arith.addf %62, %68 : vector<128x32xf32>
    %70 = vector.extract_strided_slice %11 {offsets = [352, 0], sizes = [128, 32], strides = [1, 1]} : vector<480x32xf32> to vector<128x32xf32>
    %71 = vector.extract_strided_slice %12 {offsets = [8, 0], sizes = [1, 32], strides = [1, 1]} : vector<9x32xf32> to vector<1x32xf32>
    %72 = vector.shape_cast %71 : vector<1x32xf32> to vector<32xf32>
    %73 = vector.shape_cast %72 : vector<32xf32> to vector<1x32xf32>
    %74 = vector.broadcast %73 : vector<1x32xf32> to vector<128x32xf32>
    %75 = arith.mulf %70, %74 : vector<128x32xf32>
    %76 = arith.addf %69, %75 : vector<128x32xf32>
    %c0_10 = arith.constant 0 : index
    %c0_11 = arith.constant 0 : index
    %77 = vector.load %arg5[%c0_10, %c0_11] : memref<1x32xf32, #tpu.memory_space<vmem>>, vector<1x32xf32>
    %78 = vector.broadcast %77 : vector<1x32xf32> to vector<128x32xf32>
    %79 = arith.addf %76, %78 : vector<128x32xf32>
    %cst_12 = arith.constant 0.000000e+00 : f32
    %cst_13 = arith.constant 6.000000e+00 : f32
    %80 = vector.broadcast %cst_12 : f32 to vector<128x32xf32>
    %81 = arith.maximumf %80, %79 : vector<128x32xf32>
    %82 = vector.broadcast %cst_13 : f32 to vector<128x32xf32>
    %83 = arith.minimumf %82, %81 : vector<128x32xf32>
    %c0_14 = arith.constant 0 : index
    %c0_15 = arith.constant 0 : index
    %84 = vector.load %arg6[%c0_14, %c0_15] : memref<32x8xf32, #tpu.memory_space<vmem>>, vector<32x8xf32>
    %cst_16 = arith.constant dense<0.000000e+00> : vector<128x8xf32>
    %85 = tpu.matmul %83, %84, %cst_16 {dimension_numbers = #tpu.dot_dimension_numbers<[1], [0], [0], [1], [0, 0, 1, 1], [], []>} : vector<128x32xf32>, vector<32x8xf32>, vector<128x8xf32> -> vector<128x8xf32>
    %c0_17 = arith.constant 0 : index
    %c0_18 = arith.constant 0 : index
    %86 = vector.load %arg7[%c0_17, %c0_18] : memref<1x8xf32, #tpu.memory_space<vmem>>, vector<1x8xf32>
    %87 = vector.broadcast %86 : vector<1x8xf32> to vector<128x8xf32>
    %88 = arith.addf %85, %87 : vector<128x8xf32>
    %cst_19 = arith.constant 0.000000e+00 : f32
    %cst_20 = arith.constant 6.000000e+00 : f32
    %89 = vector.broadcast %cst_19 : f32 to vector<128x8xf32>
    %90 = arith.maximumf %89, %88 : vector<128x8xf32>
    %91 = vector.broadcast %cst_20 : f32 to vector<128x8xf32>
    %92 = arith.minimumf %91, %90 : vector<128x8xf32>
    %c0_21 = arith.constant 0 : index
    %c0_22 = arith.constant 0 : index
    %c0_23 = arith.constant 0 : index
    %93 = vector.load %arg8[%c0_21, %c0_22, %c0_23] : memref<1x128x8xf32, #tpu.memory_space<vmem>>, vector<1x128x8xf32>
    %94 = vector.shape_cast %93 : vector<1x128x8xf32> to vector<128x8xf32>
    %95 = arith.addf %92, %94 : vector<128x8xf32>
    %c0_24 = arith.constant 0 : index
    %c0_25 = arith.constant 0 : index
    %c0_26 = arith.constant 0 : index
    %96 = vector.load %arg9[%c0_24, %c0_25, %c0_26] : memref<1x128x8xf32, #tpu.memory_space<vmem>>, vector<1x128x8xf32>
    %97 = vector.shape_cast %96 : vector<1x128x8xf32> to vector<128x8xf32>
    %98 = vector.shape_cast %95 : vector<128x8xf32> to vector<1x128x8xf32>
    tpu.vector_store %arg9[%c0_24, %c0_25, %c0_26], %98 {strides = array<i32>} : memref<1x128x8xf32, #tpu.memory_space<vmem>>, vector<1x128x8xf32>,
    return
  }
  func.func @transform_0(%arg0: i32, %arg1: i32) -> (i32, i32, i32, i32, i32) {
    %c0_i32 = arith.constant 0 : i32
    %c0_i32_0 = arith.constant 0 : i32
    %c0_i32_1 = arith.constant 0 : i32
    %c0_i32_2 = arith.constant 0 : i32
    %c0_i32_3 = arith.constant 0 : i32
    return %arg0, %c0_i32, %c0_i32_0, %c0_i32_1, %c0_i32_2 : i32, i32, i32, i32, i32
  }
  func.func @transform_1(%arg0: i32, %arg1: i32) -> (i32, i32) {
    %c0_i32 = arith.constant 0 : i32
    %c0_i32_0 = arith.constant 0 : i32
    %c0_i32_1 = arith.constant 0 : i32
    return %c0_i32, %c0_i32_0 : i32, i32
  }
  func.func @transform_2(%arg0: i32, %arg1: i32) -> (i32, i32) {
    %c0_i32 = arith.constant 0 : i32
    %c0_i32_0 = arith.constant 0 : i32
    %c0_i32_1 = arith.constant 0 : i32
    return %c0_i32, %c0_i32_0 : i32, i32
  }
  func.func @transform_3(%arg0: i32, %arg1: i32) -> (i32, i32) {
    %c0_i32 = arith.constant 0 : i32
    %c0_i32_0 = arith.constant 0 : i32
    %c0_i32_1 = arith.constant 0 : i32
    return %c0_i32, %c0_i32_0 : i32, i32
  }
  func.func @transform_4(%arg0: i32, %arg1: i32) -> (i32, i32) {
    %c0_i32 = arith.constant 0 : i32
    %c0_i32_0 = arith.constant 0 : i32
    %c0_i32_1 = arith.constant 0 : i32
    return %c0_i32, %c0_i32_0 : i32, i32
  }
  func.func @transform_5(%arg0: i32, %arg1: i32) -> (i32, i32) {
    %c0_i32 = arith.constant 0 : i32
    %c0_i32_0 = arith.constant 0 : i32
    %c0_i32_1 = arith.constant 0 : i32
    return %c0_i32, %c0_i32_0 : i32, i32
  }
  func.func @transform_6(%arg0: i32, %arg1: i32) -> (i32, i32, i32) {
    %c0_i32 = arith.constant 0 : i32
    %c0_i32_0 = arith.constant 0 : i32
    return %arg0, %arg1, %c0_i32 : i32, i32, i32
  }
  func.func @transform_7(%arg0: i32, %arg1: i32) -> (i32, i32, i32) {
    %c0_i32 = arith.constant 0 : i32
    %c0_i32_0 = arith.constant 0 : i32
    return %arg0, %arg1, %c0_i32 : i32, i32, i32
  }
}

</mosaic_0001>

<bundles_post_ra>
// kernel: tpu_custom_call.1
= control target key start
LH: loop header
LB: loop body
LE: loop exit
PB: predicated region body
PF: predicated region fallthrough
CT: control target
= control target key end

     0   :  { %s2288_s24 = smov 0   ;;  %s2290_s25 = smov 0   ;;  %s3103_s0 = inlined_call_operand.vmem [shape: f32[2,3,18,16,9], index: 0, kind: input, shape index: {}]   ;;  %s3104_s1 = inlined_call_operand.vmem [shape: f32[9,32], index: 1, kind: input, shape index: {}]   ;;  %s3105_s2 = inlined_call_operand.vmem [shape: f32[9,32], index: 2, kind: input, shape index: {}]   ;;  %s3106_s3 = inlined_call_operand.vmem [shape: f32[1,32], index: 3, kind: input, shape index: {}]   ;;  %s3107_s4 = inlined_call_operand.vmem [shape: f32[32,8], index: 4, kind: input, shape index: {}]   ;;  %s3108_s5 = inlined_call_operand.vmem [shape: f32[1,8], index: 5, kind: input, shape index: {}]   ;;  %s3109_s6 = inlined_call_operand.vmem [shape: f32[2,256,8], index: 6, kind: input, shape index: {}]   ;;  %s3110_s7 = inlined_call_operand.vmem [shape: f32[2,256,8], index: 7, kind: output, shape index: {}]  }
   0x1   :  { %s2292_s26 = smov 0   ;;  %s2294_s27 = smov 0  }
   0x2   :  { %s2296_s28 = smov 0  }
   0x3 LB: > { %s26_s29 = sadd.s32 1, %s2237_s26  ;;  %s29_s30 = sadd.s32 1, %s2241_s27  ;;  %s2245_s28 = sphi %s2296_s28, %s17_s28   ;;  %s2241_s27 = sphi %s2294_s27, %s3208_s27   ;;  %s2237_s26 = sphi %s2292_s26, %s3207_s26   ;;  %s2233_s25 = sphi %s2290_s25, %s3206_s25   ;;  %s2229_s24 = sphi %s2288_s24, %s3205_s24  }
   0x4   : > { %p27_p0 = scmp.ge.s32.totalorder %s26_s29, 2  ;;  %p1848_p1 = scmp.ge.s32.totalorder %s2245_s28, 1 }
   0x5   : > { %p268_p2 = scmp.lt.s32.totalorder %s2245_s28, 5 }
   0x6   : > { %s3210_s29 = smov (%p27_p0, %s26_s29), 0  ;;  %s3212_s30 = smov (!%p27_p0, %s29_s30), %s2241_s27 }
   0x7   : > { %p269_p3 = pnand %p1848_p1, %p268_p2  ;;  %p31_p4 = scmp.ge.s32.totalorder %s3212_s30, 2 }
   0x9   : > { %s3214_s30 = smov (%p31_p4, %s3212_s30), 0  ;;  %272 = sbr.rel (%p269_p3) target bundleno = 590 (0x24e), region = 48 }
  0x10   : > { %v401_v0 = vld [vmem:[%s3104_s1] sm:$0xff]  ;;  %v402_v1 = vld [vmem:[%s3104_s1 + $0x8] sm:$0x1]  ;;  %vm584_vm0 = vcmask 1040384   ;;  %p313_p5 = scmp.lt.s32.totalorder %s2233_s25, 1  ;;  %vm2247_vm1 = vmmov 1  }
  0x11   : > { %v2149_v2 = vpack.c.bf16 %v402_v1, %v401_v0  ;;  %vm2150_vm2 = vmpackc.low %vm584_vm0, %vm2247_vm1  ;;  %s1940_s13 = sshll.u32 %s2229_s24, 7  ;;  %vm403_vm3 = vcmask 72704   ;;  %v1454_v63 = vld [vmem:[%s3107_s4] sm:$0xff]  ;;  %v1455_v0 = vld [vmem:[%s3107_s4 + $0x8] sm:$0xff]  ;;  %vm1465_vm4 = vcmask 261120   ;;  %vm1723_vm5 = vcmask 64512  }
  0x12   : > { %s3216_s25 = smov (!%p313_p5, %s2233_s25), 1  ;;  %v2155_v1 = vpack.c.bf16 %v1455_v0, %v1454_v63 }
  0x13   : > { %2151 = vmatprep.subr.msk.bf16.mxu0 %vm2150_vm2, %v2149_v2  ;;  %2163 = vmatprep.subr.msk.bf16.mxu1 %vm2150_vm2, %v2149_v2  ;;  %s2165_s12 = smul.u32 864, %s3216_s25 }
  0x14   : > { %2154 = vmatpush3.bf16.msk.msra.mxu0 %vm2150_vm2, %v2149_v2  ;;  %2164 = vmatpush3.bf16.msk.msra.mxu1 %vm2150_vm2, %v2149_v2  ;;  %v1456_v2 = vld [vmem:[%s3107_s4 + $0x10] sm:$0xff] }
  0x15   : > { %s317_s16 = scalar_lea.vmem %s3103_s0, %s2165_s12  ;;  %2156 = vmatprep.subr.bf16.mxu1 %v2155_v1 }
  0x16   : > { %s2333_s17 = scalar_lea.vmem %s317_s16, %s1940_s13  ;;  %s1850_s16 = sshll.u32 %s2229_s24, 4 }
  0x17   : > { %v341_v3 = vld [vmem:[%s2333_s17] sm:$0xff]  ;;  %v342_v4 = vld [vmem:[%s2333_s17 + $0x8] sm:$0xff]  ;;  %v343_v5 = vld [vmem:[%s2333_s17 + $0x10] sm:$0xff]  ;;  %p321_p6 = scmp.lt.s32.totalorder %s1850_s16, 31 }
  0x18   : > { %2027 = vmatprep.mubr.msk.f32.mxu0 %vm403_vm3, %v341_v3  ;;  %v344_v6 = vld [vmem:[%s2333_s17 + $0x18] sm:$0xff]  ;;  %v345_v7 = vld [vmem:[%s2333_s17 + $0x20] sm:$0xff]  ;;  %v379_v8 = vld [vmem:[%s2333_s17 + $0x1b0] sm:$0xff] }
  0x19   : > { %2028 = vmatmul.mubr.msk.f32.vlgmr.msra.gmra.mrb[0].mxu0 %vm403_vm3, %v342_v4  ;;  %v346_v9 = vld [vmem:[%s2333_s17 + $0x28] sm:$0xff]  ;;  %2084 = vmatprep.mubr.msk.f32.mxu1 %vm403_vm3, %v379_v8  ;;  %v380_v10 = vld [vmem:[%s2333_s17 + $0x1b8] sm:$0xff]  ;;  %v347_v11 = vld [vmem:[%s2333_s17 + $0x30] sm:$0xff]  ;;  %s3218_s16 = smov (!%p321_p6, %s1850_s16), 31 }
  0x1a   : > { %2030 = vmatprep.mubr.msk.f32.mxu0 %vm403_vm3, %v343_v5  ;;  %2085 = vmatmul.mubr.msk.f32.vlgmr.msra.gmra.mrb[0].mxu1 %vm403_vm3, %v380_v10  ;;  %v381_v12 = vld [vmem:[%s2333_s17 + $0x240] sm:$0xff]  ;;  %v382_v13 = vld [vmem:[%s2333_s17 + $0x248] sm:$0xff]  ;;  %v383_v14 = vld [vmem:[%s2333_s17 + $0x250] sm:$0xff]  ;;  %v1075_v5 = vlaneseq }
  0x1b   : > { %2087 = vmatprep.mubr.msk.f32.mxu1 %vm403_vm3, %v381_v12  ;;  %v348_v15 = vld [vmem:[%s2333_s17 + $0x38] sm:$0xff]  ;;  %v349_v16 = vld [vmem:[%s2333_s17 + $0x40] sm:$0xff]  ;;  %v350_v19 = vld [vmem:[%s2333_s17 + $0x48] sm:$0xff]  ;;  %2158 = vmatpush3.bf16.msra.mxu1 %v2155_v1 }
  0x1c   : > { %v384_v17 = vld [vmem:[%s2333_s17 + $0x258] sm:$0xff]  ;;  %v385_v18 = vld [vmem:[%s2333_s17 + $0x260] sm:$0xff]  ;;  %v351_v20 = vld [vmem:[%s2333_s17 + $0x50] sm:$0xff] }
  0x1d   : > { %2031 = vmatmul.mubr.msk.f32.gmra.mrb[2].mxu0 %vm403_vm3, %v344_v6  ;;  %v386_v21 = vld [vmem:[%s2333_s17 + $0x268] sm:$0xff]  ;;  %v387_v22 = vld [vmem:[%s2333_s17 + $0x270] sm:$0xff]  ;;  %v352_v23 = vld [vmem:[%s2333_s17 + $0x58] sm:$0xff]  ;;  %v1076_v6 = vshrl.u32 %v1075_v5, 7 }
  0x1e   : > { %2033 = vmatprep.mubr.msk.f32.mxu0 %vm403_vm3, %v345_v7  ;;  %2088 = vmatmul.mubr.msk.f32.gmra.mrb[2].mxu1 %vm403_vm3, %v382_v13  ;;  %v353_v24 = vld [vmem:[%s2333_s17 + $0x60] sm:$0xff]  ;;  %v388_v25 = vld [vmem:[%s2333_s17 + $0x278] sm:$0xff]  ;;  %v354_v27 = vld [vmem:[%s2333_s17 + $0x68] sm:$0xff] }
  0x1f   : > { %2090 = vmatprep.mubr.msk.f32.mxu1 %vm403_vm3, %v383_v14  ;;  %v389_v26 = vld [vmem:[%s2333_s17 + $0x280] sm:$0xff]  ;;  %v355_v28 = vld [vmem:[%s2333_s17 + $0x70] sm:$0xff]  ;;  %v390_v29 = vld [vmem:[%s2333_s17 + $0x288] sm:$0xff]  ;;  %v1077_v8 = vsub.s32 0, %v1076_v6  ;;  %v1185_v13 = vsub.s32 3, %v1076_v6  ;;  %v1293_v14 = vsub.s32 6, %v1076_v6 }
  0x20   : > { %v391_v30 = vld [vmem:[%s2333_s17 + $0x290] sm:$0xff]  ;;  %v356_v31 = vld [vmem:[%s2333_s17 + $0x78] sm:$0xff]  ;;  %v357_v32 = vld [vmem:[%s2333_s17 + $0x80] sm:$0xff] }
  0x21   : > { %2034 = vmatmul.mubr.msk.f32.gmra.mrb[4].mxu0 %vm403_vm3, %v346_v9  ;;  %v392_v33 = vld [vmem:[%s2333_s17 + $0x298] sm:$0xff]  ;;  %v393_v34 = vld [vmem:[%s2333_s17 + $0x2a0] sm:$0xff]  ;;  %v358_v35 = vld [vmem:[%s2333_s17 + $0x88] sm:$0xff] }
  0x22   : > { %2036 = vmatprep.mubr.msk.f32.mxu0 %vm403_vm3, %v347_v11  ;;  %2091 = vmatmul.mubr.msk.f32.gmra.mrb[4].mxu1 %vm403_vm3, %v384_v17  ;;  %v359_v36 = vld [vmem:[%s2333_s17 + $0x90] sm:$0xff]  ;;  %v394_v37 = vld [vmem:[%s2333_s17 + $0x2a8] sm:$0xff]  ;;  %v360_v39 = vld [vmem:[%s2333_s17 + $0x98] sm:$0xff]  ;;  %v1113_v17 = vsub.s32 1, %v1076_v6 }
  0x23   : > { %2093 = vmatprep.mubr.msk.f32.mxu1 %vm403_vm3, %v385_v18  ;;  %v395_v38 = vld [vmem:[%s2333_s17 + $0x2b0] sm:$0xff]  ;;  %v361_v40 = vld [vmem:[%s2333_s17 + $0x120] sm:$0xff]  ;;  %v396_v41 = vld [vmem:[%s2333_s17 + $0x2b8] sm:$0xff] }
  0x24   : > { %v397_v42 = vld [vmem:[%s2333_s17 + $0x2c0] sm:$0xff]  ;;  %v362_v43 = vld [vmem:[%s2333_s17 + $0x128] sm:$0xff]  ;;  %v363_v44 = vld [vmem:[%s2333_s17 + $0x130] sm:$0xff] }
  0x25   : > { %2037 = vmatmul.mubr.msk.f32.gmra.mrb[6].mxu0 %vm403_vm3, %v348_v15  ;;  %v398_v45 = vld [vmem:[%s2333_s17 + $0x2c8] sm:$0xff]  ;;  %v399_v46 = vld [vmem:[%s2333_s17 + $0x2d0] sm:$0xff]  ;;  %v364_v47 = vld [vmem:[%s2333_s17 + $0x138] sm:$0xff] }
  0x26   : > { %2039 = vmatprep.mubr.msk.f32.mxu0 %vm403_vm3, %v349_v16  ;;  %2094 = vmatmul.mubr.msk.f32.gmra.mrb[6].mxu1 %vm403_vm3, %v386_v21  ;;  %v365_v48 = vld [vmem:[%s2333_s17 + $0x140] sm:$0xff]  ;;  %v400_v49 = vld [vmem:[%s2333_s17 + $0x2d8] sm:$0xff]  ;;  %v366_v50 = vld [vmem:[%s2333_s17 + $0x148] sm:$0xff]  ;;  %v1329_v16 = vsub.s32 7, %v1076_v6  ;;  %v1149_v21 = vsub.s32 2, %v1076_v6 }
  0x27   : > { %2096 = vmatprep.mubr.msk.f32.mxu1 %vm403_vm3, %v387_v22  ;;  %v367_v51 = vld [vmem:[%s2333_s17 + $0x150] sm:$0xff]  ;;  %v368_v52 = vld [vmem:[%s2333_s17 + $0x158] sm:$0xff]  ;;  %v369_v53 = vld [vmem:[%s2333_s17 + $0x160] sm:$0xff]  ;;  %v1221_v22 = vsub.s32 4, %v1076_v6 }
  0x28   : > { %v370_v54 = vld [vmem:[%s2333_s17 + $0x168] sm:$0xff]  ;;  %v371_v55 = vld [vmem:[%s2333_s17 + $0x170] sm:$0xff]  ;;  %v372_v56 = vld [vmem:[%s2333_s17 + $0x178] sm:$0xff] }
  0x29   : > { %2040 = vmatmul.mubr.msk.f32.gmra.mrb[8].mxu0 %vm403_vm3, %v350_v19  ;;  %v373_v57 = vld [vmem:[%s2333_s17 + $0x180] sm:$0xff]  ;;  %v374_v58 = vld [vmem:[%s2333_s17 + $0x188] sm:$0xff]  ;;  %v375_v59 = vld [vmem:[%s2333_s17 + $0x190] sm:$0xff] }
  0x2a   : > { %2042 = vmatprep.mubr.msk.f32.mxu0 %vm403_vm3, %v351_v20  ;;  %2097 = vmatmul.mubr.msk.f32.gmra.mrb[8].mxu1 %vm403_vm3, %v388_v25  ;;  %v376_v60 = vld [vmem:[%s2333_s17 + $0x198] sm:$0xff]  ;;  %v377_v61 = vld [vmem:[%s2333_s17 + $0x1a0] sm:$0xff]  ;;  %v378_v62 = vld [vmem:[%s2333_s17 + $0x1a8] sm:$0xff]  ;;  %s1851_s17 = sshll.u32 %s3216_s25, 5 }
  0x2b   : > { %2099 = vmatprep.mubr.msk.f32.mxu1 %vm403_vm3, %v389_v26  ;;  %v1457_v3 = vld [vmem:[%s3107_s4 + $0x18] sm:$0xff]  ;;  %v1073_v11 = vld [vmem:[%s3105_s2] sm:$0xff]  ;;  %s324_s18 = sadd.s32 %s1851_s17, %s3218_s16 }
  0x2c   : > { %v2159_v4 = vpack.c.bf16 %v1457_v3, %v1456_v2  ;;  %v2470_v18 = vrot.slane %v1073_v11, %v1077_v8  ;;  %s1852_s19 = sshll.u32 %s324_s18, 3 }
  0x2d   : > { %2043 = vmatmul.mubr.msk.f32.gmra.mrb[10].mxu0 %vm403_vm3, %v352_v23  ;;  %s3017_s8 = scalar_lea.vmem %s3109_s6, %s1852_s19  ;;  %s3026_s9 = scalar_lea.vmem %s3110_s7, %s1852_s19 }
  0x2e   : > { %2045 = vmatprep.mubr.msk.f32.mxu0 %vm403_vm3, %v353_v24  ;;  %2100 = vmatmul.mubr.msk.f32.gmra.mrb[10].mxu1 %vm403_vm3, %v390_v29  ;;  %v2472_v29 = vrot.slane %v1073_v11, %v1185_v13 }
  0x2f   : > { %2102 = vmatprep.mubr.msk.f32.mxu1 %vm403_vm3, %v391_v30  ;;  %2160 = vmatprep.subr.bf16.mxu1 %v2159_v4  ;;  %v2474_v30 = vrot.slane %v1073_v11, %v1293_v14 }
  0x30   : > { %2162 = vmatpush3.bf16.msra.mxu1 %v2159_v4 }
  0x31   : > { %2046 = vmatmul.mubr.msk.f32.gmra.mrb[12].mxu0 %vm403_vm3, %v354_v27  ;;  %v1257_v27 = vsub.s32 5, %v1076_v6 }
  0x32   : > { %2048 = vmatprep.mubr.msk.f32.mxu0 %vm403_vm3, %v355_v28  ;;  %2103 = vmatmul.mubr.msk.f32.gmra.mrb[12].mxu1 %vm403_vm3, %v392_v33 }
  0x33   : > { %2105 = vmatprep.mubr.msk.f32.mxu1 %vm403_vm3, %v393_v34 }
  0x35   : > { %2049 = vmatmul.mubr.msk.f32.gmra.mrb[14].mxu0 %vm403_vm3, %v356_v31 }
  0x36   : > { %2051 = vmatprep.mubr.msk.f32.mxu0 %vm403_vm3, %v357_v32  ;;  %2106 = vmatmul.mubr.msk.f32.gmra.mrb[14].mxu1 %vm403_vm3, %v394_v37 }
  0x37   : > { %2108 = vmatprep.mubr.msk.f32.mxu1 %vm403_vm3, %v395_v38 }
  0x39   : > { %2052 = vmatmul.mubr.msk.f32.gmra.mrb[16].mxu0 %vm403_vm3, %v358_v35  ;;  %v2476_v35 = vrot.slane %v1073_v11, %v1329_v16 }
  0x3a   : > { %2054 = vmatprep.mubr.msk.f32.mxu0 %vm403_vm3, %v359_v36  ;;  %2109 = vmatmul.mubr.msk.f32.gmra.mrb[16].mxu1 %vm403_vm3, %v396_v41  ;;  %v2478_v36 = vrot.slane %v1073_v11, %v1113_v17  ;;  %v2482_v41 = vrot.slane %v1073_v11, %v1221_v22 }
  0x3b   : > { %2111 = vmatprep.mubr.msk.f32.mxu1 %vm403_vm3, %v397_v42 }
  0x3d   : > { %2055 = vmatmul.mubr.msk.f32.gmra.mrb[18].mxu0 %vm403_vm3, %v360_v39 }
  0x3e   : > { %2057 = vmatprep.mubr.msk.f32.mxu0 %vm403_vm3, %v361_v40  ;;  %2112 = vmatmul.mubr.msk.f32.gmra.mrb[18].mxu1 %vm403_vm3, %v398_v45  ;;  %v2480_v40 = vrot.slane %v1073_v11, %v1149_v21 }
  0x3f   : > { %2114 = vmatprep.mubr.msk.f32.mxu1 %vm403_vm3, %v399_v46  ;;  %v2490_v46 = vrot.slane %v1073_v11, %v1257_v27 }
  0x41   : > { %2058 = vmatmul.mubr.msk.f32.gmra.mrb[20].mxu0 %vm403_vm3, %v362_v43 }
  0x42   : > { %2060 = vmatprep.mubr.msk.f32.mxu0 %vm403_vm3, %v363_v44  ;;  %2115 = vmatmul.mubr.msk.f32.gmra.mrb[20].mxu1 %vm403_vm3, %v400_v49 }
  0x45   : > { %2061 = vmatmul.mubr.msk.f32.gmra.mrb[22].mxu0 %vm403_vm3, %v364_v47 }
  0x46   : > { %2063 = vmatprep.mubr.msk.f32.mxu0 %vm403_vm3, %v365_v48 }
  0x49   : > { %2064 = vmatmul.mubr.msk.f32.gmra.mrb[24].mxu0 %vm403_vm3, %v366_v50 }
  0x4a   : > { %2066 = vmatprep.mubr.msk.f32.mxu0 %vm403_vm3, %v367_v51 }
  0x4d   : > { %2067 = vmatmul.mubr.msk.f32.gmra.mrb[26].mxu0 %vm403_vm3, %v368_v52 }
  0x4e   : > { %2069 = vmatprep.mubr.msk.f32.mxu0 %vm403_vm3, %v369_v53 }
  0x51   : > { %2070 = vmatmul.mubr.msk.f32.gmra.mrb[28].mxu0 %vm403_vm3, %v370_v54 }
  0x52   : > { %2072 = vmatprep.mubr.msk.f32.mxu0 %vm403_vm3, %v371_v55 }
  0x55   : > { %2073 = vmatmul.mubr.msk.f32.gmra.mrb[30].mxu0 %vm403_vm3, %v372_v56 }
  0x56   : > { %2075 = vmatprep.mubr.msk.f32.mxu0 %vm403_vm3, %v373_v57 }
  0x59   : > { %2076 = vmatmul.mubr.msk.f32.gmra.mrb[32].mxu0 %vm403_vm3, %v374_v58 }
  0x5a   : > { %2078 = vmatprep.mubr.msk.f32.mxu0 %vm403_vm3, %v375_v59 }
  0x5d   : > { %2079 = vmatmul.mubr.msk.f32.gmra.mrb[34].mxu0 %vm403_vm3, %v376_v60 }
  0x5e   : > { %2081 = vmatprep.mubr.msk.f32.mxu0 %vm403_vm3, %v377_v61 }
  0x61   : > { %2082 = vmatmul.mubr.msk.f32.gmra.mrb[36].mxu0 %vm403_vm3, %v378_v62 }
  0xec   : > { %v2029_v7 = vpop.f32.mrb[0].mxu0 }
  0xed   : > { %v654_v9 = vpop.f32.mrb[1].mxu0  ;;  %v954_v10 = vmax.f32 %v2029_v7, 0.0  ;;  %v2086_v26 = vpop.f32.mrb[0].mxu1 }
  0xee   : > { %v953_v12 = vmax.f32 %v654_v9, 0.0  ;;  %v844_v31 = vpop.f32.mrb[1].mxu1  ;;  %v992_v34 = vmax.f32 %v2086_v26, 0.0 }
  0xef   : > { %v1014_v23 = vmin.f32 %v954_v10, 6.0  ;;  %v991_v39 = vmax.f32 %v844_v31, 0.0 }
  0xf0   : > { %v2032_v15 = vpop.f32.mrb[2].mxu0  ;;  %v1013_v24 = vmin.f32 %v953_v12, 6.0  ;;  %v2501_v55 = vmin.f32 %v992_v34, 6.0 }
  0xf1   : > { %v956_v19 = vmax.f32 %v2032_v15, 0.0  ;;  %v664_v20 = vpop.f32.mrb[3].mxu0  ;;  %v2485_v42 = vmul.f32 %v2470_v18, %v1014_v23  ;;  %v2089_v45 = vpop.f32.mrb[2].mxu1  ;;  %v2509_v61 = vmin.f32 %v991_v39, 6.0 }
  0xf2   : > { %v955_v25 = vmax.f32 %v664_v20, 0.0  ;;  %v2488_v43 = vmul.f32 %v2470_v18, %v1013_v24  ;;  %v994_v50 = vmax.f32 %v2089_v45, 0.0  ;;  %v854_v51 = vpop.f32.mrb[3].mxu1  ;;  %3113 = vst [vmem:[#allocation2_spill] sm:$0xff] %v2501_v55 }
  0xf3   : > { %v1016_v28 = vmin.f32 %v956_v19, 6.0  ;;  %v993_v56 = vmax.f32 %v854_v51, 0.0  ;;  %3114 = vst [vmem:[#allocation3_spill] sm:$0xff] %v2509_v61 }
  0xf4   : > { %v1015_v32 = vmin.f32 %v955_v25, 6.0  ;;  %v2035_v33 = vpop.f32.mrb[4].mxu0  ;;  %v1054_v4 = vmin.f32 %v994_v50, 6.0 }
  0xf5   : > { %v958_v37 = vmax.f32 %v2035_v33, 0.0  ;;  %v674_v38 = vpop.f32.mrb[5].mxu0  ;;  %v2493_v47 = vmul.f32 %v2470_v18, %v1016_v28  ;;  %v2496_v48 = vmul.f32 %v2472_v29, %v1016_v28  ;;  %v2092_v2 = vpop.f32.mrb[4].mxu1  ;;  %v1053_v5 = vmin.f32 %v993_v56, 6.0 }
  0xf6   : > { %v957_v44 = vmax.f32 %v674_v38, 0.0  ;;  %v2499_v52 = vmul.f32 %v2470_v18, %v1015_v32  ;;  %v2504_v57 = vmul.f32 %v2472_v29, %v1015_v32  ;;  %v996_v6 = vmax.f32 %v2092_v2, 0.0  ;;  %v864_v7 = vpop.f32.mrb[5].mxu1 }
  0xf7   : > { %v1018_v49 = vmin.f32 %v958_v37, 6.0  ;;  %v995_v12 = vmax.f32 %v864_v7, 0.0  ;;  %v2545_v25 = vmul.f32 %v2480_v40, %v1054_v4  ;;  %v2548_v26 = vmul.f32 %v2480_v40, %v1053_v5 }
  0xf8   : > { %v1017_v53 = vmin.f32 %v957_v44, 6.0  ;;  %v2038_v54 = vpop.f32.mrb[6].mxu0  ;;  %v1056_v27 = vmin.f32 %v996_v6, 6.0 }
  0xf9   : > { %v2507_v58 = vmul.f32 %v2470_v18, %v1018_v49  ;;  %v960_v59 = vmax.f32 %v2038_v54, 0.0  ;;  %v684_v60 = vpop.f32.mrb[7].mxu0  ;;  %v2512_v62 = vmul.f32 %v2472_v29, %v1018_v49  ;;  %v2515_v63 = vmul.f32 %v2474_v30, %v1018_v49  ;;  %v2095_v23 = vpop.f32.mrb[6].mxu1 }
  0xfa   : > { %v2518_v0 = vmul.f32 %v2470_v18, %v1017_v53  ;;  %v959_v1 = vmax.f32 %v684_v60, 0.0  ;;  %v2521_v8 = vmul.f32 %v2472_v29, %v1017_v53  ;;  %v2524_v9 = vmul.f32 %v2474_v30, %v1017_v53  ;;  %v874_v28 = vpop.f32.mrb[7].mxu1 }
  0xfb   : > { %v1020_v3 = vmin.f32 %v960_v59, 6.0  ;;  %v1055_v33 = vmin.f32 %v995_v12, 6.0  ;;  %v998_v34 = vmax.f32 %v2095_v23, 0.0  ;;  %v997_v37 = vmax.f32 %v874_v28, 0.0 }
  0xfc   : > { %v1019_v10 = vmin.f32 %v959_v1, 6.0  ;;  %v2041_v11 = vpop.f32.mrb[8].mxu0  ;;  %v2571_v60 = vmul.f32 %v2480_v40, %v1056_v27  ;;  %v2574_v1 = vmul.f32 %v2490_v46, %v1056_v27 }
  0xfd   : > { %v2527_v13 = vmul.f32 %v2470_v18, %v1020_v3  ;;  %v2530_v14 = vmul.f32 %v2472_v29, %v1020_v3  ;;  %v2533_v15 = vmul.f32 %v2474_v30, %v1020_v3  ;;  %v962_v16 = vmax.f32 %v2041_v11, 0.0  ;;  %v694_v17 = vpop.f32.mrb[9].mxu0  ;;  %v2568_v56 = vpop.f32.mrb[8].mxu1 }
  0xfe   : > { %v2536_v19 = vmul.f32 %v2470_v18, %v1019_v10  ;;  %v2539_v20 = vmul.f32 %v2472_v29, %v1019_v10  ;;  %v2542_v21 = vmul.f32 %v2474_v30, %v1019_v10  ;;  %v961_v22 = vmax.f32 %v694_v17, 0.0  ;;  %v884_v3 = vpop.f32.mrb[9].mxu1  ;;  %v2585_v10 = vld [vmem:[%s3105_s2 + $0x8] ss:$0 sm:$0xff] }
  0xff   : > { %v1022_v24 = vmin.f32 %v962_v16, 6.0  ;;  %v2577_v2 = vmul.f32 %v2480_v40, %v1055_v33  ;;  %v2580_v6 = vmul.f32 %v2490_v46, %v1055_v33  ;;  %v1058_v7 = vmin.f32 %v998_v34, 6.0  ;;  %3120 = vst [vmem:[#allocation9_spill] sm:$0xff] %v2585_v10 }
 0x100   : > { %v1021_v31 = vmin.f32 %v961_v22, 6.0  ;;  %v2044_v32 = vpop.f32.mrb[10].mxu0  ;;  %v1057_v11 = vmin.f32 %v997_v37, 6.0 }
 0x101   : > { %v2551_v38 = vmul.f32 %v2470_v18, %v1022_v24  ;;  %v2554_v39 = vmul.f32 %v2472_v29, %v1022_v24  ;;  %v2557_v44 = vmul.f32 %v2474_v30, %v1022_v24  ;;  %v964_v45 = vmax.f32 %v2044_v32, 0.0  ;;  %v704_v49 = vpop.f32.mrb[11].mxu0  ;;  %v2101_v32 = vpop.f32.mrb[10].mxu1 }
 0x102   : > { %v2560_v50 = vmul.f32 %v2470_v18, %v1021_v31  ;;  %v2563_v51 = vmul.f32 %v2472_v29, %v1021_v31  ;;  %v2566_v53 = vmul.f32 %v2474_v30, %v1021_v31  ;;  %v963_v54 = vmax.f32 %v704_v49, 0.0  ;;  %v894_v49 = vpop.f32.mrb[11].mxu1 }
 0x103   : > { %3115 = vst [vmem:[#allocation4_spill] sm:$0xff] %v2551_v38  ;;  %3116 = vst [vmem:[#allocation5_spill] sm:$0xff] %v2557_v44  ;;  %v1024_v59 = vmin.f32 %v964_v45, 6.0  ;;  %v2606_v34 = vmul.f32 %v2480_v40, %v1058_v7  ;;  %v2609_v37 = vmul.f32 %v2490_v46, %v1058_v7  ;;  %v2612_v45 = vmul.f32 %v2585_v10, %v1058_v7 }
 0x104   : > { %3117 = vst [vmem:[#allocation6_spill] sm:$0xff] %v2560_v50  ;;  %3118 = vst [vmem:[#allocation7_spill] sm:$0xff] %v2563_v51  ;;  %v1023_v4 = vmin.f32 %v963_v54, 6.0  ;;  %v2047_v5 = vpop.f32.mrb[12].mxu0  ;;  %v1001_v50 = vmax.f32 %v894_v49, 0.0 }
 0x105   : > { %3119 = vst [vmem:[#allocation8_spill] sm:$0xff] %v2566_v53  ;;  %v2588_v12 = vmul.f32 %v2470_v18, %v1024_v59  ;;  %v2591_v16 = vmul.f32 %v2472_v29, %v1024_v59  ;;  %v2594_v17 = vmul.f32 %v2474_v30, %v1024_v59  ;;  %v966_v22 = vmax.f32 %v2047_v5, 0.0  ;;  %v714_v23 = vpop.f32.mrb[13].mxu0 }
 0x106   : > { %v2597_v24 = vmul.f32 %v2470_v18, %v1023_v4  ;;  %v2600_v27 = vmul.f32 %v2472_v29, %v1023_v4  ;;  %v2603_v28 = vmul.f32 %v2474_v30, %v1023_v4  ;;  %v965_v31 = vmax.f32 %v714_v23, 0.0 }
 0x107   : > { %3121 = vst [vmem:[#allocation10_spill] sm:$0xff] %v2588_v12  ;;  %3122 = vst [vmem:[#allocation11_spill] sm:$0xff] %v2591_v16  ;;  %v1026_v33 = vmin.f32 %v966_v22, 6.0  ;;  %v2615_v5 = vmul.f32 %v2480_v40, %v1057_v11  ;;  %v2618_v4 = vmul.f32 %v2490_v46, %v1057_v11  ;;  %v2621_v22 = vmul.f32 %v2585_v10, %v1057_v11 }
 0x108   : > { %3123 = vst [vmem:[#allocation12_spill] sm:$0xff] %v2594_v17  ;;  %3124 = vst [vmem:[#allocation13_spill] sm:$0xff] %v2597_v24  ;;  %v1025_v54 = vmin.f32 %v965_v31, 6.0  ;;  %v2050_v59 = vpop.f32.mrb[14].mxu0  ;;  %v2104_v17 = vpop.f32.mrb[12].mxu1  ;;  %v1000_v16 = vmax.f32 %v2568_v56, 0.0 }
 0x109   : > { %3125 = vst [vmem:[#allocation14_spill] sm:$0xff] %v2600_v27  ;;  %3126 = vst [vmem:[#allocation15_spill] sm:$0xff] %v2603_v28  ;;  %v2624_v23 = vmul.f32 %v2470_v18, %v1026_v33  ;;  %v2627_v61 = vmul.f32 %v2472_v29, %v1026_v33  ;;  %v2630_v7 = vmul.f32 %v2474_v30, %v1026_v33  ;;  %v968_v31 = vmax.f32 %v2050_v59, 0.0  ;;  %v724_v55 = vpop.f32.mrb[15].mxu0  ;;  %v904_v33 = vpop.f32.mrb[13].mxu1 }
 0x10a   : > { %v2633_v28 = vmul.f32 %v2470_v18, %v1025_v54  ;;  %v2636_v27 = vmul.f32 %v2472_v29, %v1025_v54  ;;  %v2639_v11 = vmul.f32 %v2474_v30, %v1025_v54  ;;  %v967_v24 = vmax.f32 %v724_v55, 0.0 }
 0x10b   : > { %3127 = vst [vmem:[#allocation16_spill] sm:$0xff] %v2624_v23  ;;  %3128 = vst [vmem:[#allocation17_spill] sm:$0xff] %v2627_v61  ;;  %v1028_v23 = vmin.f32 %v968_v31, 6.0  ;;  %v999_v61 = vmax.f32 %v884_v3, 0.0  ;;  %v1002_v12 = vmax.f32 %v2101_v32, 0.0  ;;  %v1004_v38 = vmax.f32 %v2104_v17, 0.0 }
 0x10c   : > { %3129 = vst [vmem:[#allocation18_spill] sm:$0xff] %v2630_v7  ;;  %3130 = vst [vmem:[#allocation19_spill] sm:$0xff] %v2633_v28  ;;  %v1027_v7 = vmin.f32 %v967_v24, 6.0  ;;  %v2053_v59 = vpop.f32.mrb[16].mxu0  ;;  %v1003_v53 = vmax.f32 %v904_v33, 0.0  ;;  %v2660_v32 = vpop.f32.mrb[14].mxu1 }
 0x10d   : > { %3131 = vst [vmem:[#allocation20_spill] sm:$0xff] %v2636_v27  ;;  %3132 = vst [vmem:[#allocation21_spill] sm:$0xff] %v2639_v11  ;;  %v2643_v28 = vmul.f32 %v2470_v18, %v1028_v23  ;;  %v2646_v27 = vmul.f32 %v2472_v29, %v1028_v23  ;;  %v2649_v55 = vmul.f32 %v2474_v30, %v1028_v23  ;;  %v970_v54 = vmax.f32 %v2053_v59, 0.0  ;;  %v734_v31 = vpop.f32.mrb[17].mxu0  ;;  %v914_v23 = vpop.f32.mrb[15].mxu1 }
 0x10e   : > { %v2652_v56 = vmul.f32 %v2470_v18, %v1027_v7  ;;  %v2655_v3 = vmul.f32 %v2472_v29, %v1027_v7  ;;  %v2658_v17 = vmul.f32 %v2474_v30, %v1027_v7  ;;  %v969_v24 = vmax.f32 %v734_v31, 0.0 }
 0x10f   : > { %3133 = vst [vmem:[#allocation22_spill] sm:$0xff] %v2643_v28  ;;  %3134 = vst [vmem:[#allocation23_spill] sm:$0xff] %v2646_v27  ;;  %v1030_v49 = vmin.f32 %v970_v54, 6.0  ;;  %v1060_v33 = vmin.f32 %v1000_v16, 6.0  ;;  %v1059_v28 = vmin.f32 %v999_v61, 6.0  ;;  %v1062_v27 = vmin.f32 %v1002_v12, 6.0 }
 0x110   : > { %3135 = vst [vmem:[#allocation24_spill] sm:$0xff] %v2649_v55  ;;  %3136 = vst [vmem:[#allocation25_spill] sm:$0xff] %v2652_v56  ;;  %v1029_v55 = vmin.f32 %v969_v24, 6.0  ;;  %v2056_v59 = vpop.f32.mrb[18].mxu0  ;;  %v1061_v11 = vmin.f32 %v1001_v50, 6.0  ;;  %v1064_v51 = vmin.f32 %v1004_v38, 6.0 }
 0x111   : > { %3137 = vst [vmem:[#allocation26_spill] sm:$0xff] %v2655_v3  ;;  %3138 = vst [vmem:[#allocation27_spill] sm:$0xff] %v2658_v17  ;;  %v1063_v18 = vmin.f32 %v1003_v53, 6.0  ;;  %v2663_v56 = vmul.f32 %v2472_v29, %v1030_v49  ;;  %v2666_v3 = vmul.f32 %v2474_v30, %v1030_v49  ;;  %v972_v7 = vmax.f32 %v2056_v59, 0.0  ;;  %v744_v31 = vpop.f32.mrb[19].mxu0  ;;  %v2110_v53 = vpop.f32.mrb[16].mxu1 }
 0x112   : > { %v2669_v17 = vmul.f32 %v2480_v40, %v1060_v33  ;;  %v2672_v61 = vmul.f32 %v2472_v29, %v1029_v55  ;;  %v2675_v12 = vmul.f32 %v2474_v30, %v1029_v55  ;;  %v971_v50 = vmax.f32 %v744_v31, 0.0  ;;  %v924_v29 = vpop.f32.mrb[17].mxu1 }
 0x113   : > { %3139 = vst [vmem:[#allocation28_spill] sm:$0xff] %v2663_v56  ;;  %3140 = vst [vmem:[#allocation29_spill] sm:$0xff] %v2666_v3  ;;  %v2678_v38 = vmul.f32 %v2490_v46, %v1060_v33  ;;  %v1032_v16 = vmin.f32 %v972_v7, 6.0  ;;  %v2681_v54 = vmul.f32 %v2585_v10, %v1060_v33  ;;  %v2684_v24 = vmul.f32 %v2480_v40, %v1059_v28 }
 0x114   : > { %3141 = vst [vmem:[#allocation30_spill] sm:$0xff] %v2672_v61  ;;  %3142 = vst [vmem:[#allocation31_spill] sm:$0xff] %v2675_v12  ;;  %v2687_v49 = vmul.f32 %v2490_v46, %v1059_v28  ;;  %v1031_v59 = vmin.f32 %v971_v50, 6.0  ;;  %v2059_v61 = vpop.f32.mrb[20].mxu0  ;;  %v2690_v55 = vmul.f32 %v2585_v10, %v1059_v28  ;;  %v2693_v31 = vmul.f32 %v2480_v40, %v1062_v27 }
 0x115   : > { %v2696_v7 = vmul.f32 %v2490_v46, %v1062_v27  ;;  %v2699_v33 = vmul.f32 %v2474_v30, %v1032_v16  ;;  %v974_v12 = vmax.f32 %v2059_v61, 0.0  ;;  %v754_v3 = vpop.f32.mrb[21].mxu0  ;;  %v2702_v56 = vmul.f32 %v2585_v10, %v1062_v27  ;;  %v2716_v16 = vpop.f32.mrb[18].mxu1 }
 0x116   : > { %3143 = vst [vmem:[#allocation32_spill] sm:$0xff] %v2690_v55  ;;  %3144 = vst [vmem:[#allocation33_spill] sm:$0xff] %v2693_v31  ;;  %v2705_v50 = vmul.f32 %v2480_v40, %v1061_v11  ;;  %v2708_v28 = vmul.f32 %v2474_v30, %v1031_v59  ;;  %v973_v55 = vmax.f32 %v754_v3, 0.0  ;;  %v2711_v31 = vmul.f32 %v2490_v46, %v1061_v11  ;;  %v2727_v30 = vpop.f32.mrb[19].mxu1 }
 0x117   : > { %3145 = vst [vmem:[#allocation34_spill] sm:$0xff] %v2696_v7  ;;  %3146 = vst [vmem:[#allocation35_spill] sm:$0xff] %v2699_v33  ;;  %v2714_v7 = vmul.f32 %v2585_v10, %v1061_v11  ;;  %v1034_v61 = vmin.f32 %v974_v12, 6.0  ;;  %v2719_v33 = vmul.f32 %v2480_v40, %v1064_v51  ;;  %v2722_v27 = vmul.f32 %v2490_v46, %v1064_v51 }
 0x118   : > { %3147 = vst [vmem:[#allocation36_spill] sm:$0xff] %v2702_v56  ;;  %3148 = vst [vmem:[#allocation37_spill] sm:$0xff] %v2705_v50  ;;  %v2725_v50 = vmul.f32 %v2585_v10, %v1064_v51  ;;  %v1033_v3 = vmin.f32 %v973_v55, 6.0  ;;  %v2062_v59 = vpop.f32.mrb[22].mxu0  ;;  %v2733_v11 = vmul.f32 %v2490_v46, %v1063_v18  ;;  %v2736_v12 = vmul.f32 %v2585_v10, %v1063_v18  ;;  %v2741_v56 = vpop.f32.mrb[20].mxu1 }
 0x119   : > { %3149 = vst [vmem:[#allocation38_spill] sm:$0xff] %v2708_v28  ;;  %3150 = vst [vmem:[#allocation39_spill] sm:$0xff] %v2711_v31  ;;  %v2730_v28 = vmul.f32 %v2480_v40, %v1063_v18  ;;  %v1006_v51 = vmax.f32 %v2660_v32, 0.0  ;;  %v1007_v31 = vmax.f32 %v924_v29, 0.0 }
 0x11a   : > { %3151 = vst [vmem:[#allocation40_spill] sm:$0xff] %v2714_v7  ;;  %3152 = vst [vmem:[#allocation41_spill] sm:$0xff] %v2716_v16  ;;  %v1116_v16 = vmul.f32 %v2478_v36, %v1034_v61  ;;  %v1008_v7 = vmax.f32 %v2110_v53, 0.0  ;;  %v2748_v61 = vpop.f32.mrb[21].mxu1 }
 0x11b   : > { %3153 = vst [vmem:[#allocation42_spill] sm:$0xff] %v2719_v33  ;;  %3154 = vst [vmem:[#allocation43_spill] sm:$0xff] %v2722_v27  ;;  %v976_v33 = vmax.f32 %v2062_v59, 0.0  ;;  %v764_v27 = vpop.f32.mrb[23].mxu0  ;;  %v2744_v44 = vmin.f32 %v1006_v51, 6.0 }
 0x11c   : > { %3155 = vst [vmem:[#allocation44_spill] sm:$0xff] %v2725_v50  ;;  %3156 = vst [vmem:[#allocation45_spill] sm:$0xff] %v2727_v30  ;;  %v1005_v50 = vmax.f32 %v914_v23, 0.0  ;;  %v1115_v30 = vmul.f32 %v2478_v36, %v1033_v3  ;;  %v975_v55 = vmax.f32 %v764_v27, 0.0  ;;  %v2065_v23 = vpop.f32.mrb[24].mxu0  ;;  %v2751_v10 = vmin.f32 %v1008_v7, 6.0 }
 0x11d   : > { %3157 = vst [vmem:[#allocation46_spill] sm:$0xff] %v2730_v28  ;;  %3158 = vst [vmem:[#allocation47_spill] sm:$0xff] %v2733_v11  ;;  %v1132_v28 = vadd.f32 %v1116_v16, %v2485_v42  ;;  %v1036_v11 = vmin.f32 %v976_v33, 6.0  ;;  %v2753_v27 = vmin.f32 %v1007_v31, 6.0  ;;  %v978_v33 = vmax.f32 %v2065_v23, 0.0  ;;  %v774_v16 = vpop.f32.mrb[25].mxu0 }
 0x11e   : > { %v2746_v18 = vmin.f32 %v1005_v50, 6.0  ;;  %v1131_v59 = vadd.f32 %v1115_v30, %v2488_v43  ;;  %v1035_v32 = vmin.f32 %v975_v55, 6.0  ;;  %v977_v30 = vmax.f32 %v774_v16, 0.0 }
 0x11f   : > { %v1168_v53 = vadd.f32 %v2545_v25, %v1132_v28  ;;  %v1118_v29 = vmul.f32 %v2478_v36, %v1036_v11  ;;  %v1224_v42 = vmul.f32 %v2482_v41, %v1036_v11  ;;  %v1038_v51 = vmin.f32 %v978_v33, 6.0 }
 0x120   : > { %v1167_v50 = vadd.f32 %v2548_v26, %v1131_v59  ;;  %v1117_v3 = vmul.f32 %v2478_v36, %v1035_v32  ;;  %v1223_v43 = vmul.f32 %v2482_v41, %v1035_v32  ;;  %v2765_v25 = vmul.f32 %v2480_v40, %v2744_v44  ;;  %v2068_v26 = vpop.f32.mrb[26].mxu0 }
 0x121   : > { %v1134_v7 = vadd.f32 %v1118_v29, %v2493_v47  ;;  %v1204_v31 = vadd.f32 %v2496_v48, %v1168_v53  ;;  %v1037_v55 = vmin.f32 %v977_v30, 6.0  ;;  %v2771_v59 = vmul.f32 %v2490_v46, %v2744_v44  ;;  %v784_v53 = vpop.f32.mrb[27].mxu0 }
 0x122   : > { %v1133_v28 = vadd.f32 %v1117_v3, %v2499_v52  ;;  %v1203_v11 = vadd.f32 %v2504_v57, %v1167_v50  ;;  %v1120_v48 = vmul.f32 %v2478_v36, %v1038_v51  ;;  %v1226_v23 = vmul.f32 %v2482_v41, %v1038_v51 }
 0x123   : > { %v1240_v32 = vadd.f32 %v1224_v42, %v1204_v31  ;;  %v1170_v47 = vadd.f32 %v2571_v60, %v1134_v7  ;;  %v1332_v52 = vmul.f32 %v2476_v35, %v1038_v51  ;;  %v1119_v57 = vmul.f32 %v2478_v36, %v1037_v55 }
 0x124   : > { %v1239_v29 = vadd.f32 %v1223_v43, %v1203_v11  ;;  %v1169_v33 = vadd.f32 %v2577_v2, %v1133_v28  ;;  %v1136_v42 = vadd.f32 %v1120_v48, %v2507_v58  ;;  %v1225_v60 = vmul.f32 %v2482_v41, %v1037_v55  ;;  %v2071_v7 = vpop.f32.mrb[28].mxu0 }
 0x125   : > { %v1206_v16 = vadd.f32 %v2512_v62, %v1170_v47  ;;  %v1276_v50 = vadd.f32 %v2574_v1, %v1240_v32  ;;  %v1135_v43 = vadd.f32 %v1119_v57, %v2518_v0  ;;  %v1331_v2 = vmul.f32 %v2476_v35, %v1037_v55  ;;  %v794_v1 = vpop.f32.mrb[29].mxu0 }
 0x126   : > { %v1205_v3 = vadd.f32 %v2521_v8, %v1169_v33  ;;  %v1275_v30 = vadd.f32 %v2580_v6, %v1239_v29  ;;  %v1172_v62 = vadd.f32 %v2606_v34, %v1136_v42  ;;  %v980_v28 = vmax.f32 %v2068_v26, 0.0 }
 0x127   : > { %v1312_v31 = vadd.f32 %v2515_v63, %v1276_v50  ;;  %v1242_v51 = vadd.f32 %v1226_v23, %v1206_v16  ;;  %v1171_v32 = vadd.f32 %v2615_v5, %v1135_v43  ;;  %v979_v8 = vmax.f32 %v784_v53, 0.0  ;;  %v2796_v63 = vld [vmem:[%s3106_s3] ss:$0 sm:$0xff] }
 0x128   : > { %v1311_v58 = vadd.f32 %v2524_v9, %v1275_v30  ;;  %v1241_v11 = vadd.f32 %v1225_v60, %v1205_v3  ;;  %v1040_v0 = vmin.f32 %v980_v28, 6.0  ;;  %v1208_v55 = vadd.f32 %v2530_v14, %v1172_v62  ;;  %v2074_v23 = vpop.f32.mrb[30].mxu0 }
 0x129   : > { %v1348_v47 = vadd.f32 %v1332_v52, %v1312_v31  ;;  %v1278_v6 = vadd.f32 %v2609_v37, %v1242_v51  ;;  %v1039_v26 = vmin.f32 %v979_v8, 6.0  ;;  %v1207_v9 = vadd.f32 %v2539_v20, %v1171_v32  ;;  %v804_v29 = vpop.f32.mrb[31].mxu0  ;;  %v3159_v32 = vld [vmem:[#allocation5_spill] sm:$0xff] }
 0x12a   : > { %v1347_v48 = vadd.f32 %v1331_v2, %v1311_v58  ;;  %v1277_v34 = vadd.f32 %v2618_v4, %v1241_v11  ;;  %v1122_v53 = vmul.f32 %v2478_v36, %v1040_v0  ;;  %v1228_v37 = vmul.f32 %v2482_v41, %v1040_v0 }
 0x12b   : > { %v1384_v5 = vadd.f32 %v2612_v45, %v1348_v47  ;;  %v1314_v14 = vadd.f32 %v2533_v15, %v1278_v6  ;;  %v1334_v52 = vmul.f32 %v2476_v35, %v1040_v0  ;;  %v1121_v4 = vmul.f32 %v2478_v36, %v1039_v26  ;;  %v3162_v0 = vld [vmem:[#allocation8_spill] sm:$0xff] }
 0x12c   : > { %v2805_v33 = vadd.f32 %v2621_v22, %v1347_v48  ;;  %v1227_v57 = vmul.f32 %v2482_v41, %v1039_v26  ;;  %v1138_v45 = vadd.f32 %v1122_v53, %v2527_v13  ;;  %v1244_v16 = vadd.f32 %v1228_v37, %v1208_v55  ;;  %v2815_v3 = vpop.f32.mrb[32].mxu0  ;;  %v3163_v53 = vld [vmem:[#allocation4_spill] sm:$0xff] }
 0x12d   : > { %v1407_v20 = vadd.f32 %v2796_v63, %v1384_v5  ;;  %v1313_v50 = vadd.f32 %v2542_v21, %v1277_v34  ;;  %v1350_v42 = vadd.f32 %v1334_v52, %v1314_v14  ;;  %v1137_v15 = vadd.f32 %v1121_v4, %v2536_v19  ;;  %v814_v51 = vpop.f32.mrb[33].mxu0 }
 0x12e   : > { %v1243_v60 = vadd.f32 %v1227_v57, %v1207_v9  ;;  %v1333_v22 = vmul.f32 %v2476_v35, %v1039_v26  ;;  %v1174_v43 = vadd.f32 %v2669_v17, %v1138_v45  ;;  %v1280_v2 = vadd.f32 %v2678_v38, %v1244_v16  ;;  %v3160_v17 = vld [vmem:[#allocation32_spill] sm:$0xff] }
 0x12f   : > { %v1423_v30 = vmax.f32 %v1407_v20, 0.0  ;;  %v982_v31 = vmax.f32 %v2071_v7, 0.0  ;;  %v2820_v13 = vadd.f32 %v2681_v54, %v1350_v42  ;;  %v1173_v21 = vadd.f32 %v2684_v24, %v1137_v15  ;;  %v3161_v7 = vld [vmem:[#allocation7_spill] sm:$0xff] }
 0x130   : > { %v1349_v62 = vadd.f32 %v1333_v22, %v1313_v50  ;;  %v1279_v19 = vadd.f32 %v2687_v49, %v1243_v60  ;;  %v1210_v11 = vadd.f32 %v2554_v39, %v1174_v43  ;;  %v1316_v8 = vadd.f32 %v3159_v32, %v1280_v2  ;;  %v2833_v55 = vpop.f32.mrb[34].mxu0  ;;  %v3164_v50 = vld [vmem:[#allocation33_spill] sm:$0xff]  ;;  %v3166_v60 = vld [vmem:[#allocation36_spill] sm:$0xff]  ;;  %v3167_v43 = vld [vmem:[#allocation6_spill] sm:$0xff] }
 0x131   : > { %v2824_v28 = vmin.f32 %v1423_v30, 6.0  ;;  %v1042_v58 = vmin.f32 %v982_v31, 6.0  ;;  %v981_v38 = vmax.f32 %v794_v1, 0.0  ;;  %v1209_v6 = vadd.f32 %v3161_v7, %v1173_v21  ;;  %v2838_v39 = vpop.f32.mrb[35].mxu0  ;;  %v3168_v21 = vld [vmem:[#allocation10_spill] sm:$0xff]  ;;  %v3170_v32 = vld [vmem:[#allocation12_spill] sm:$0xff] }
 0x132   : > { %v2829_v47 = vadd.f32 %v3160_v17, %v1349_v62  ;;  %v1315_v54 = vadd.f32 %v3162_v0, %v1279_v19  ;;  %v984_v34 = vmax.f32 %v2074_v23, 0.0  ;;  %v983_v9 = vmax.f32 %v804_v29, 0.0  ;;  %v3165_v29 = vld [vmem:[#allocation34_spill] sm:$0xff]  ;;  %v3172_v0 = vld [vmem:[#allocation39_spill] sm:$0xff] }
 0x133   : > { %v1124_v24 = vmul.f32 %v2478_v36, %v1042_v58  ;;  %v1230_v49 = vmul.f32 %v2482_v41, %v1042_v58  ;;  %v1336_v48 = vmul.f32 %v2476_v35, %v1042_v58  ;;  %v1041_v26 = vmin.f32 %v981_v38, 6.0  ;;  %v3169_v58 = vld [vmem:[#allocation11_spill] sm:$0xff]  ;;  %v3171_v38 = vld [vmem:[#allocation37_spill] sm:$0xff] }
 0x134   : > { %v986_v5 = vmax.f32 %v2815_v3, 0.0  ;;  %v985_v1 = vmax.f32 %v814_v51, 0.0  ;;  %v1044_v4 = vmin.f32 %v984_v34, 6.0  ;;  %v1043_v16 = vmin.f32 %v983_v9, 6.0  ;;  %v2845_v23 = vpop.f32.mrb[36].mxu0 }
 0x135   : > { %v1140_v37 = vadd.f32 %v1124_v24, %v3163_v53  ;;  %v1246_v14 = vadd.f32 %v1230_v49, %v1210_v11  ;;  %v1352_v52 = vadd.f32 %v1336_v48, %v1316_v8  ;;  %v1123_v57 = vmul.f32 %v2478_v36, %v1041_v26  ;;  %v2853_v30 = vpop.f32.mrb[37].mxu0  ;;  %v3173_v49 = vld [vmem:[#allocation40_spill] sm:$0xff]  ;;  %v3174_v53 = vld [vmem:[#allocation13_spill] sm:$0xff] }
 0x136   : > { %v1229_v20 = vmul.f32 %v2482_v41, %v1041_v26  ;;  %v1335_v45 = vmul.f32 %v2476_v35, %v1041_v26  ;;  %v1126_v3 = vmul.f32 %v2478_v36, %v1044_v4  ;;  %v1232_v62 = vmul.f32 %v2482_v41, %v1044_v4 }
 0x137   : > { %v1176_v42 = vadd.f32 %v3164_v50, %v1140_v37  ;;  %v1282_v15 = vadd.f32 %v3165_v29, %v1246_v14  ;;  %v2850_v22 = vadd.f32 %v3166_v60, %v1352_v52  ;;  %v1139_v2 = vadd.f32 %v1123_v57, %v3167_v43  ;;  %v3175_v14 = vld [vmem:[#allocation14_spill] sm:$0xff]  ;;  %v3178_v50 = vld [vmem:[#allocation43_spill] sm:$0xff]  ;;  %v3179_v29 = vld [vmem:[#allocation44_spill] sm:$0xff] }
 0x138   : > { %v1245_v31 = vadd.f32 %v1229_v20, %v1209_v6  ;;  %v1351_v51 = vadd.f32 %v1335_v45, %v1315_v54  ;;  %v1142_v19 = vadd.f32 %v1126_v3, %v3168_v21  ;;  %v1338_v17 = vmul.f32 %v2476_v35, %v1044_v4  ;;  %v3176_v4 = vld [vmem:[#allocation15_spill] sm:$0xff]  ;;  %v3177_v20 = vld [vmem:[#allocation42_spill] sm:$0xff] }
 0x139   : > { %v1212_v11 = vadd.f32 %v3169_v58, %v1176_v42  ;;  %v1318_v8 = vadd.f32 %v3170_v32, %v1282_v15  ;;  %v1175_v7 = vadd.f32 %v3171_v38, %v1139_v2  ;;  %v1125_v6 = vmul.f32 %v2478_v36, %v1043_v16 }
 0x13a   : > { %v1281_v24 = vadd.f32 %v3172_v0, %v1245_v31  ;;  %v2864_v48 = vadd.f32 %v3173_v49, %v1351_v51  ;;  %v1231_v26 = vmul.f32 %v2482_v41, %v1043_v16  ;;  %v1337_v9 = vmul.f32 %v2476_v35, %v1043_v16  ;;  %v3180_v31 = vld [vmem:[#allocation46_spill] sm:$0xff]  ;;  %v3181_v16 = vld [vmem:[#allocation17_spill] sm:$0xff]  ;;  %v3185_v0 = vld [vmem:[#allocation16_spill] sm:$0xff] }
 0x13b   : > { %v1248_v54 = vadd.f32 %v1232_v62, %v1212_v11  ;;  %v1354_v34 = vadd.f32 %v1338_v17, %v1318_v8  ;;  %v1141_v37 = vadd.f32 %v1125_v6, %v3174_v53  ;;  %v1211_v52 = vadd.f32 %v3175_v14, %v1175_v7  ;;  %v3182_v11 = vld [vmem:[#allocation18_spill] sm:$0xff]  ;;  %v3183_v8 = vld [vmem:[#allocation47_spill] sm:$0xff]  ;;  %v3188_v14 = vld [vmem:[#allocation9_spill] sm:$0xff] }
 0x13c   : > { %v1317_v57 = vadd.f32 %v3176_v4, %v1281_v24  ;;  %v1178_v45 = vadd.f32 %v3177_v20, %v1142_v19  ;;  %v1046_v60 = vmin.f32 %v986_v5, 6.0  ;;  %v1045_v3 = vmin.f32 %v985_v1, 6.0  ;;  %v3184_v1 = vld [vmem:[#allocation20_spill] sm:$0xff] }
 0x13d   : > { %v1284_v42 = vadd.f32 %v3178_v50, %v1248_v54  ;;  %v2875_v15 = vadd.f32 %v3179_v29, %v1354_v34  ;;  %v1247_v43 = vadd.f32 %v1231_v26, %v1211_v52  ;;  %v1177_v51 = vadd.f32 %v3180_v31, %v1141_v37  ;;  %v3186_v34 = vld [vmem:[#allocation19_spill] sm:$0xff] }
 0x13e   : > { %v1353_v2 = vadd.f32 %v1337_v9, %v1317_v57  ;;  %v1214_v62 = vadd.f32 %v3181_v16, %v1178_v45  ;;  %v1128_v21 = vmul.f32 %v2478_v36, %v1046_v60  ;;  %v1234_v58 = vmul.f32 %v2482_v41, %v1046_v60  ;;  %v3187_v9 = vld [vmem:[#allocation21_spill] sm:$0xff] }
 0x13f   : > { %v1320_v32 = vadd.f32 %v3182_v11, %v1284_v42  ;;  %v1340_v19 = vmul.f32 %v2476_v35, %v1046_v60  ;;  %v1283_v17 = vadd.f32 %v3183_v8, %v1247_v43  ;;  %v1127_v5 = vmul.f32 %v2478_v36, %v1045_v3 }
 0x140   : > { %v2885_v38 = vadd.f32 %v2736_v12, %v1353_v2  ;;  %v1213_v7 = vadd.f32 %v3184_v1, %v1177_v51  ;;  %v1144_v24 = vadd.f32 %v1128_v21, %v3185_v0  ;;  %v1250_v49 = vadd.f32 %v1234_v58, %v1214_v62  ;;  %v3191_v21 = vld [vmem:[#allocation26_spill] sm:$0xff] }
 0x141   : > { %v1356_v6 = vadd.f32 %v1340_v19, %v1320_v32  ;;  %v1233_v54 = vmul.f32 %v2482_v41, %v1045_v3  ;;  %v1143_v26 = vadd.f32 %v1127_v5, %v3186_v34  ;;  %v1319_v53 = vadd.f32 %v3187_v9, %v1283_v17  ;;  %v3192_v32 = vld [vmem:[#allocation27_spill] sm:$0xff]  ;;  %v3194_v9 = vld [vmem:[#allocation25_spill] sm:$0xff] }
 0x142   : > { %v1339_v37 = vmul.f32 %v2476_v35, %v1045_v3  ;;  %v1376_v12 = vmul.f32 %v3188_v14, %v2744_v44  ;;  %v1180_v4 = vadd.f32 %v2765_v25, %v1144_v24  ;;  %v1286_v57 = vadd.f32 %v2771_v59, %v1250_v49  ;;  %v3189_v3 = vld [vmem:[#allocation23_spill] sm:$0xff]  ;;  %v3190_v25 = vld [vmem:[#allocation24_spill] sm:$0xff]  ;;  %v3193_v49 = vld [vmem:[#allocation22_spill] sm:$0xff] }
 0x143   : > { %v1249_v52 = vadd.f32 %v1233_v54, %v1213_v7  ;;  %v1163_v20 = vmul.f32 %v2480_v40, %v2746_v18  ;;  %v1269_v42 = vmul.f32 %v2490_v46, %v2746_v18  ;;  %v1375_v29 = vmul.f32 %v3188_v14, %v2746_v18 }
 0x144   : > { %v1355_v45 = vadd.f32 %v1339_v37, %v1319_v53  ;;  %v2900_v50 = vadd.f32 %v1376_v12, %v1356_v6  ;;  %v988_v44 = vmax.f32 %v2833_v55, 0.0  ;;  %v1216_v43 = vadd.f32 %v3189_v3, %v1180_v4 }
 0x145   : > { %v1179_v60 = vadd.f32 %v1163_v20, %v1143_v26  ;;  %v1322_v2 = vadd.f32 %v3190_v25, %v1286_v57  ;;  %v1285_v59 = vadd.f32 %v1269_v42, %v1249_v52  ;;  %v987_v51 = vmax.f32 %v2838_v39, 0.0 }
 0x146   : > { %v2909_v31 = vadd.f32 %v1375_v29, %v1355_v45  ;;  %v1166_v16 = vmul.f32 %v2480_v40, %v2751_v10  ;;  %v1048_v62 = vmin.f32 %v988_v44, 6.0  ;;  %v1272_v18 = vmul.f32 %v2490_v46, %v2751_v10  ;;  %v3195_v29 = vld [vmem:[#allocation28_spill] sm:$0xff] }
 0x147   : > { %v1215_v58 = vadd.f32 %v3191_v21, %v1179_v60  ;;  %v1378_v55 = vmul.f32 %v3188_v14, %v2751_v10  ;;  %v1047_v11 = vmin.f32 %v987_v51, 6.0  ;;  %v1321_v19 = vadd.f32 %v3192_v32, %v1285_v59  ;;  %v3198_v51 = vld [vmem:[#allocation31_spill] sm:$0xff] }
 0x148   : > { %v1165_v8 = vmul.f32 %v2480_v40, %v2753_v27  ;;  %v1271_v39 = vmul.f32 %v2490_v46, %v2753_v27  ;;  %v1130_v17 = vmul.f32 %v2478_v36, %v1048_v62  ;;  %v1236_v5 = vmul.f32 %v2482_v41, %v1048_v62 }
 0x149   : > { %v1342_v1 = vmul.f32 %v2476_v35, %v1048_v62  ;;  %v1377_v7 = vmul.f32 %v3188_v14, %v2753_v27  ;;  %v1129_v10 = vmul.f32 %v2478_v36, %v1047_v11  ;;  %v1235_v0 = vmul.f32 %v2482_v41, %v1047_v11 }
 0x14a   : > { %v1341_v24 = vmul.f32 %v2476_v35, %v1047_v11  ;;  %v1406_v40 = vadd.f32 %v2796_v63, %v2805_v33  ;;  %v1146_v6 = vadd.f32 %v1130_v17, %v3193_v49  ;;  %v1252_v54 = vadd.f32 %v1236_v5, %v1216_v43 }
 0x14b   : > { %v1358_v34 = vadd.f32 %v1342_v1, %v1322_v2  ;;  %v990_v26 = vmax.f32 %v2845_v23, 0.0  ;;  %v1145_v53 = vadd.f32 %v1129_v10, %v3194_v9  ;;  %v1251_v37 = vadd.f32 %v1235_v0, %v1215_v58  ;;  %v3196_v23 = vld [vmem:[#allocation29_spill] sm:$0xff]  ;;  %v3197_v2 = vld [vmem:[#allocation30_spill] sm:$0xff] }
 0x14c   : > { %v1357_v12 = vadd.f32 %v1341_v24, %v1321_v19  ;;  %v1422_v27 = vmax.f32 %v1406_v40, 0.0  ;;  %v1182_v52 = vadd.f32 %v1166_v16, %v1146_v6  ;;  %v1288_v36 = vadd.f32 %v1272_v18, %v1252_v54  ;;  %v3199_v18 = vld [vmem:[#allocation41_spill] sm:$0xff] }
 0x14d   : > { %v2937_v4 = vadd.f32 %v1378_v55, %v1358_v34  ;;  %v1050_v57 = vmin.f32 %v990_v26, 6.0  ;;  %v1181_v20 = vadd.f32 %v1165_v8, %v1145_v53  ;;  %v1287_v45 = vadd.f32 %v1271_v39, %v1251_v37 }
 0x14e   : > { %v2939_v42 = vadd.f32 %v1377_v7, %v1357_v12  ;;  %v1438_v33 = vmin.f32 %v1422_v27, 6.0  ;;  %v1218_v60 = vadd.f32 %v3195_v29, %v1182_v52  ;;  %v1324_v3 = vadd.f32 %v3196_v23, %v1288_v36  ;;  %v3201_v27 = vld [vmem:[#allocation2_spill] sm:$0xff]  ;;  %v3202_v36 = vld [vmem:[#allocation35_spill] sm:$0xff] }
 0x14f   : > { %v1238_v44 = vmul.f32 %v2482_v41, %v1050_v57  ;;  %v1344_v43 = vmul.f32 %v2476_v35, %v1050_v57  ;;  %v989_v25 = vmax.f32 %v2853_v30, 0.0  ;;  %v1217_v59 = vadd.f32 %v3197_v2, %v1181_v20  ;;  %v3200_v30 = vld [vmem:[#allocation45_spill] sm:$0xff]  ;;  %v3204_v29 = vld [vmem:[#allocation38_spill] sm:$0xff] }
 0x150   : > { %2125 = vmatprep.mubr.msk.f32.mxu1 %vm1465_vm4, %v1438_v33  ;;  %v1323_v16 = vadd.f32 %v3198_v51, %v1287_v45  ;;  %v1408_v62 = vadd.f32 %v2796_v63, %v2829_v47  ;;  %v1010_v55 = vmax.f32 %v3199_v18, 0.0  ;;  %v1409_v11 = vadd.f32 %v2796_v63, %v2820_v13  ;;  %v3203_v45 = vld [vmem:[#allocation3_spill] sm:$0xff] }
 0x151   : > { %2126 = vmatmul.mubr.msk.f32.vlgmr.msra.gmra.mrb[22].mxu1 %vm1465_vm4, %v2824_v28  ;;  %v1254_v21 = vadd.f32 %v1238_v44, %v1218_v60  ;;  %v1360_v58 = vadd.f32 %v1344_v43, %v1324_v3  ;;  %v1049_v32 = vmin.f32 %v989_v25, 6.0  ;;  %v1009_v8 = vmax.f32 %v3200_v30, 0.0 }
 0x152   : > { %v1424_v19 = vmax.f32 %v1408_v62, 0.0  ;;  %v1410_v39 = vadd.f32 %v2796_v63, %v2864_v48  ;;  %v1070_v17 = vmin.f32 %v1010_v55, 6.0  ;;  %v1425_v5 = vmax.f32 %v1409_v11, 0.0 }
 0x153   : > { %v1411_v47 = vadd.f32 %v2796_v63, %v2850_v22  ;;  %v1012_v28 = vmax.f32 %v2741_v56, 0.0  ;;  %v1237_v1 = vmul.f32 %v2482_v41, %v1049_v32  ;;  %v1343_v7 = vmul.f32 %v2476_v35, %v1049_v32 }
 0x154   : > { %v1440_v10 = vmin.f32 %v1424_v19, 6.0  ;;  %v1069_v13 = vmin.f32 %v1009_v8, 6.0  ;;  %v1274_v0 = vmul.f32 %v2490_v46, %v1070_v17  ;;  %v1380_v24 = vmul.f32 %v3188_v14, %v1070_v17 }
 0x155   : > { %v1441_v40 = vmin.f32 %v1425_v5, 6.0  ;;  %v1426_v49 = vmax.f32 %v1410_v39, 0.0  ;;  %v1253_v48 = vadd.f32 %v1237_v1, %v1217_v59  ;;  %v1359_v6 = vadd.f32 %v1343_v7, %v1323_v16 }
 0x156   : > { %2128 = vmatprep.mubr.msk.f32.mxu1 %vm1465_vm4, %v1440_v10  ;;  %v1273_v22 = vmul.f32 %v2490_v46, %v1069_v13  ;;  %v1379_v56 = vmul.f32 %v3188_v14, %v1069_v13  ;;  %v1290_v54 = vadd.f32 %v1274_v0, %v1254_v21  ;;  %v1396_v41 = vadd.f32 %v1380_v24, %v1360_v58 }
 0x157   : > { %2129 = vmatmul.mubr.msk.f32.gmra.mrb[24].mxu1 %vm1465_vm4, %v1441_v40  ;;  %v1442_v34 = vmin.f32 %v1426_v49, 6.0  ;;  %v1427_v26 = vmax.f32 %v1411_v47, 0.0  ;;  %v1072_v37 = vmin.f32 %v1012_v28, 6.0  ;;  %v1011_v12 = vmax.f32 %v2748_v61, 0.0 }
 0x158   : > { %v1289_v9 = vadd.f32 %v1273_v22, %v1253_v48  ;;  %v1395_v53 = vadd.f32 %v1379_v56, %v1359_v6  ;;  %v1346_v52 = vmul.f32 %v2476_v35, %v3201_v27  ;;  %v1326_v57 = vadd.f32 %v3202_v36, %v1290_v54  ;;  %v1692_v48 = vld [vmem:[%s3017_s8 + $0x8] sm:$0xff]  ;;  %v1691_v56 = vld [vmem:[%s3017_s8] sm:$0xff]  ;;  %v1694_v27 = vld [vmem:[%s3017_s8 + $0x18] sm:$0xff] }
 0x159   : > { %2131 = vmatprep.mubr.msk.f32.mxu1 %vm1465_vm4, %v1442_v34  ;;  %v1443_v46 = vmin.f32 %v1427_v26, 6.0  ;;  %v1412_v20 = vadd.f32 %v2796_v63, %v2885_v38  ;;  %v1345_v33 = vmul.f32 %v2476_v35, %v3203_v45  ;;  %v1382_v44 = vmul.f32 %v3188_v14, %v1072_v37 }
 0x15a   : > { %v1325_v60 = vadd.f32 %v3204_v29, %v1289_v9  ;;  %v1071_v23 = vmin.f32 %v1011_v12, 6.0  ;;  %v1362_v61 = vadd.f32 %v1346_v52, %v1326_v57  ;;  %v1413_v43 = vadd.f32 %v2796_v63, %v2875_v15 }
 0x15b   : > { %2132 = vmatmul.mubr.msk.f32.gmra.mrb[26].mxu1 %vm1465_vm4, %v1443_v46  ;;  %v1428_v3 = vmax.f32 %v1412_v20, 0.0  ;;  %v1414_v38 = vadd.f32 %v2796_v63, %v2909_v31  ;;  %v1415_v16 = vadd.f32 %v2796_v63, %v2900_v50  ;;  %v1418_v62 = vadd.f32 %v2796_v63, %v1395_v53  ;;  %v1693_v46 = vld [vmem:[%s3017_s8 + $0x10] sm:$0xff] }
 0x15c   : > { %v1361_v25 = vadd.f32 %v1345_v33, %v1325_v60  ;;  %v1381_v2 = vmul.f32 %v3188_v14, %v1071_v23  ;;  %v1398_v59 = vadd.f32 %v1382_v44, %v1362_v61  ;;  %v1429_v51 = vmax.f32 %v1413_v43, 0.0  ;;  %v1696_v61 = vld [vmem:[%s3017_s8 + $0x28] sm:$0xff] }
 0x15d   : > { %v1444_v35 = vmin.f32 %v1428_v3, 6.0  ;;  %v1430_v58 = vmax.f32 %v1414_v38, 0.0  ;;  %v1416_v18 = vadd.f32 %v2796_v63, %v2939_v42  ;;  %v1431_v14 = vmax.f32 %v1415_v16, 0.0 }
 0x15e   : > { %v1397_v21 = vadd.f32 %v1381_v2, %v1361_v25  ;;  %v1445_v15 = vmin.f32 %v1429_v51, 6.0  ;;  %v1417_v31 = vadd.f32 %v2796_v63, %v2937_v4  ;;  %v1434_v32 = vmax.f32 %v1418_v62, 0.0  ;;  %v1695_v25 = vld [vmem:[%s3017_s8 + $0x20] sm:$0xff] }
 0x15f   : > { %2134 = vmatprep.mubr.msk.f32.mxu1 %vm1465_vm4, %v1444_v35  ;;  %v1446_v55 = vmin.f32 %v1430_v58, 6.0  ;;  %v1432_v11 = vmax.f32 %v1416_v18, 0.0  ;;  %v1419_v30 = vadd.f32 %v2796_v63, %v1396_v41  ;;  %v1447_v42 = vmin.f32 %v1431_v14, 6.0  ;;  %v1698_v58 = vld [vmem:[%s3017_s8 + $0x38] sm:$0xff] }
 0x160   : > { %2135 = vmatmul.mubr.msk.f32.gmra.mrb[28].mxu1 %vm1465_vm4, %v1445_v15  ;;  %v1420_v50 = vadd.f32 %v2796_v63, %v1397_v21  ;;  %v1433_v8 = vmax.f32 %v1417_v31, 0.0  ;;  %v1450_v4 = vmin.f32 %v1434_v32, 6.0  ;;  %v1421_v5 = vadd.f32 %v2796_v63, %v1398_v59  ;;  %v3012_v63 = vld [vmem:[%s3108_s5] ss:$0 sm:$0xff]  ;;  %v1697_v31 = vld [vmem:[%s3017_s8 + $0x30] sm:$0xff] }
 0x161   : > { %2137 = vmatprep.mubr.msk.f32.mxu1 %vm1465_vm4, %v1446_v55  ;;  %v1448_v19 = vmin.f32 %v1432_v11, 6.0  ;;  %v1435_v17 = vmax.f32 %v1419_v30, 0.0 }
 0x162   : > { %v1436_v39 = vmax.f32 %v1420_v50, 0.0  ;;  %v1449_v47 = vmin.f32 %v1433_v8, 6.0  ;;  %v1437_v1 = vmax.f32 %v1421_v5, 0.0  ;;  %v1700_v8 = vld [vmem:[%s3017_s8 + $0x48] sm:$0xff]  ;;  %v1699_v5 = vld [vmem:[%s3017_s8 + $0x40] sm:$0xff] }
 0x163   : > { %v1451_v7 = vmin.f32 %v1435_v17, 6.0 }
 0x164   : > { %2138 = vmatmul.mubr.msk.f32.gmra.mrb[30].mxu1 %vm1465_vm4, %v1447_v42  ;;  %v1452_v28 = vmin.f32 %v1436_v39, 6.0  ;;  %v1453_v10 = vmin.f32 %v1437_v1, 6.0 }
 0x165   : > { %2140 = vmatprep.mubr.msk.f32.mxu1 %vm1465_vm4, %v1448_v19 }
 0x168   : > { %2141 = vmatmul.mubr.msk.f32.gmra.mrb[32].mxu1 %vm1465_vm4, %v1449_v47 }
 0x169   : > { %2143 = vmatprep.mubr.msk.f32.mxu1 %vm1465_vm4, %v1450_v4 }
 0x16c   : > { %2144 = vmatmul.mubr.msk.f32.gmra.mrb[34].mxu1 %vm1465_vm4, %v1451_v7 }
 0x16d   : > { %2146 = vmatprep.mubr.msk.f32.mxu1 %vm1465_vm4, %v1452_v28 }
 0x170   : > { %2147 = vmatmul.mubr.msk.f32.gmra.mrb[36].mxu1 %vm1465_vm4, %v1453_v10 }
 0x224   : > { %v2127_v13 = vpop.f32.mrb[22].mxu1 }
 0x225   : > { %v1586_v0 = vadd.f32 %v2127_v13, %v3012_v63  ;;  %v1580_v24 = vpop.f32.mrb[23].mxu1 }
 0x226   : > { %v1581_v40 = vadd.f32 %v3012_v63, %v1580_v24  ;;  %v1702_v24 = vld [vmem:[%s3017_s8 + $0x58] sm:$0xff] }
 0x227   : > { %v1660_v49 = vmax.f32 %v1586_v0, 0.0 }
 0x228   : > { %v1659_v6 = vmax.f32 %v1581_v40, 0.0 }
 0x229   : > { %v1676_v22 = vmin.f32 %v1660_v49, 6.0 }
 0x22a   : > { %v1675_v54 = vmin.f32 %v1659_v6, 6.0  ;;  %v2130_v41 = vpop.f32.mrb[24].mxu1  ;;  %v1701_v6 = vld [vmem:[%s3017_s8 + $0x50] sm:$0xff] }
 0x22b   : > { %v1708_v34 = vadd.f32 %v1692_v48, %v1676_v22  ;;  %v1596_v26 = vadd.f32 %v2130_v41, %v3012_v63  ;;  %v1590_v9 = vpop.f32.mrb[25].mxu1 }
 0x22c   : > { %v1707_v53 = vadd.f32 %v1691_v56, %v1675_v54  ;;  %v1591_v37 = vadd.f32 %v3012_v63, %v1590_v9 }
 0x22d   : > { %1725 = vst.msk [vmem:[%s3026_s9 + $0x8] sm:$0xff] %vm1723_vm5, %v1708_v34  ;;  %v1662_v12 = vmax.f32 %v1596_v26, 0.0 }
 0x22e   : > { %1724 = vst.msk [vmem:[%s3026_s9] sm:$0xff] %vm1723_vm5, %v1707_v53  ;;  %v1661_v52 = vmax.f32 %v1591_v37, 0.0  ;;  %v2133_v36 = vpop.f32.mrb[26].mxu1  ;;  %v1704_v53 = vld [vmem:[%s3017_s8 + $0x68] sm:$0xff] }
 0x22f   : > { %v1678_v57 = vmin.f32 %v1662_v12, 6.0  ;;  %v1606_v20 = vadd.f32 %v2133_v36, %v3012_v63  ;;  %v1600_v45 = vpop.f32.mrb[27].mxu1 }
 0x230   : > { %v1677_v33 = vmin.f32 %v1661_v52, 6.0  ;;  %v1601_v29 = vadd.f32 %v3012_v63, %v1600_v45  ;;  %v1703_v52 = vld [vmem:[%s3017_s8 + $0x60] sm:$0xff] }
 0x231   : > { %v1710_v60 = vadd.f32 %v1694_v27, %v1678_v57  ;;  %v1664_v44 = vmax.f32 %v1606_v20, 0.0 }
 0x232   : > { %v1709_v23 = vadd.f32 %v1693_v46, %v1677_v33  ;;  %v1663_v3 = vmax.f32 %v1601_v29, 0.0 }
 0x233   : > { %1727 = vst.msk [vmem:[%s3026_s9 + $0x18] sm:$0xff] %vm1723_vm5, %v1710_v60  ;;  %v1680_v43 = vmin.f32 %v1664_v44, 6.0  ;;  %v2136_v38 = vpop.f32.mrb[28].mxu1  ;;  %v1706_v60 = vld [vmem:[%s3017_s8 + $0x78] sm:$0xff] }
 0x234   : > { %1726 = vst.msk [vmem:[%s3026_s9 + $0x10] sm:$0xff] %vm1723_vm5, %v1709_v23  ;;  %v1679_v2 = vmin.f32 %v1663_v3, 6.0  ;;  %v1616_v35 = vadd.f32 %v2136_v38, %v3012_v63  ;;  %v1610_v51 = vpop.f32.mrb[29].mxu1 }
 0x235   : > { %v1712_v59 = vadd.f32 %v1696_v61, %v1680_v43  ;;  %v1611_v62 = vadd.f32 %v3012_v63, %v1610_v51  ;;  %v1705_v61 = vld [vmem:[%s3017_s8 + $0x70] sm:$0xff] }
 0x236   : > { %v1711_v16 = vadd.f32 %v1695_v25, %v1679_v2  ;;  %v1666_v21 = vmax.f32 %v1616_v35, 0.0 }
 0x237   : > { %1729 = vst.msk [vmem:[%s3026_s9 + $0x28] sm:$0xff] %vm1723_vm5, %v1712_v59  ;;  %v1665_v18 = vmax.f32 %v1611_v62, 0.0  ;;  %v2139_v15 = vpop.f32.mrb[30].mxu1 }
 0x238   : > { %1728 = vst.msk [vmem:[%s3026_s9 + $0x20] sm:$0xff] %vm1723_vm5, %v1711_v16  ;;  %v1682_v14 = vmin.f32 %v1666_v21, 6.0  ;;  %v1626_v55 = vadd.f32 %v2139_v15, %v3012_v63  ;;  %v1620_v11 = vpop.f32.mrb[31].mxu1 }
 0x239   : > { %v1681_v32 = vmin.f32 %v1665_v18, 6.0  ;;  %v1621_v50 = vadd.f32 %v3012_v63, %v1620_v11 }
 0x23a   : > { %v1714_v19 = vadd.f32 %v1698_v58, %v1682_v14  ;;  %v1668_v30 = vmax.f32 %v1626_v55, 0.0 }
 0x23b   : > { %v1713_v42 = vadd.f32 %v1697_v31, %v1681_v32  ;;  %v1667_v39 = vmax.f32 %v1621_v50, 0.0  ;;  %v2142_v4 = vpop.f32.mrb[32].mxu1 }
 0x23c   : > { %1731 = vst.msk [vmem:[%s3026_s9 + $0x38] sm:$0xff] %vm1723_vm5, %v1714_v19  ;;  %v1684_v17 = vmin.f32 %v1668_v30, 6.0  ;;  %v1636_v47 = vadd.f32 %v2142_v4, %v3012_v63  ;;  %v1630_v28 = vpop.f32.mrb[33].mxu1 }
 0x23d   : > { %1730 = vst.msk [vmem:[%s3026_s9 + $0x30] sm:$0xff] %vm1723_vm5, %v1713_v42  ;;  %v1683_v1 = vmin.f32 %v1667_v39, 6.0  ;;  %v1631_v7 = vadd.f32 %v3012_v63, %v1630_v28 }
 0x23e   : > { %v1716_v10 = vadd.f32 %v1700_v8, %v1684_v17  ;;  %v1670_v13 = vmax.f32 %v1636_v47, 0.0 }
 0x23f   : > { %v1715_v0 = vadd.f32 %v1699_v5, %v1683_v1  ;;  %v1669_v40 = vmax.f32 %v1631_v7, 0.0  ;;  %v2145_v49 = vpop.f32.mrb[34].mxu1 }
 0x240   : > { %1733 = vst.msk [vmem:[%s3026_s9 + $0x48] sm:$0xff] %vm1723_vm5, %v1716_v10  ;;  %v1686_v48 = vmin.f32 %v1670_v13, 6.0  ;;  %v1646_v22 = vadd.f32 %v2145_v49, %v3012_v63  ;;  %v1640_v56 = vpop.f32.mrb[35].mxu1 }
 0x241   : > { %1732 = vst.msk [vmem:[%s3026_s9 + $0x40] sm:$0xff] %vm1723_vm5, %v1715_v0  ;;  %v1685_v54 = vmin.f32 %v1669_v40, 6.0  ;;  %v1641_v41 = vadd.f32 %v3012_v63, %v1640_v56 }
 0x242   : > { %v1718_v34 = vadd.f32 %v1702_v24, %v1686_v48  ;;  %v1672_v26 = vmax.f32 %v1646_v22, 0.0 }
 0x243   : > { %v1717_v9 = vadd.f32 %v1701_v6, %v1685_v54  ;;  %v1671_v37 = vmax.f32 %v1641_v41, 0.0  ;;  %v2148_v12 = vpop.f32.mrb[36].mxu1 }
 0x244   : > { %1735 = vst.msk [vmem:[%s3026_s9 + $0x58] sm:$0xff] %vm1723_vm5, %v1718_v34  ;;  %v1688_v27 = vmin.f32 %v1672_v26, 6.0  ;;  %v1656_v36 = vadd.f32 %v2148_v12, %v3012_v63  ;;  %v1650_v57 = vpop.f32.mrb[37].mxu1 }
 0x245   : > { %1734 = vst.msk [vmem:[%s3026_s9 + $0x50] sm:$0xff] %vm1723_vm5, %v1717_v9  ;;  %v1687_v46 = vmin.f32 %v1671_v37, 6.0  ;;  %v1651_v20 = vadd.f32 %v3012_v63, %v1650_v57 }
 0x246   : > { %v1720_v45 = vadd.f32 %v1704_v53, %v1688_v27  ;;  %v1674_v33 = vmax.f32 %v1656_v36, 0.0 }
 0x247   : > { %v1719_v29 = vadd.f32 %v1703_v52, %v1687_v46  ;;  %v1673_v44 = vmax.f32 %v1651_v20, 0.0 }
 0x248   : > { %1737 = vst.msk [vmem:[%s3026_s9 + $0x68] sm:$0xff] %vm1723_vm5, %v1720_v45  ;;  %v1690_v23 = vmin.f32 %v1674_v33, 6.0 }
 0x249   : > { %1736 = vst.msk [vmem:[%s3026_s9 + $0x60] sm:$0xff] %vm1723_vm5, %v1719_v29  ;;  %v1689_v3 = vmin.f32 %v1673_v44, 6.0 }
 0x24a   : > { %v1722_v43 = vadd.f32 %v1706_v60, %v1690_v23 }
 0x24b   : > { %v1721_v25 = vadd.f32 %v1705_v61, %v1689_v3 }
 0x24c   : > { %1739 = vst.msk [vmem:[%s3026_s9 + $0x78] sm:$0xff] %vm1723_vm5, %v1722_v43 }
 0x24d   : > { %1738 = vst.msk [vmem:[%s3026_s9 + $0x70] sm:$0xff] %vm1723_vm5, %v1721_v25 }
 0x24e PF: > { %s17_s28 = sadd.s32 1, %s2245_s28   ;;  %s3205_s24 = smov %s2237_s26 }
 0x24f   : > { %p14_p7 = scmp.ge.s32.totalorder %s17_s28, 6   ;;  %s3206_s25 = smov %s2241_s27 }
 0x250   : > { %s3207_s26 = smov %s3210_s29  ;;  %s3208_s27 = smov %s3214_s30 }
 0x251   :  { %16 = sbr.rel (!%p14_p7) target bundleno = 3 (0x3), region = 82 }

</bundles_post_ra>
